<compile_context>
chip_gen: v7x
topology: tpu7x:2x2x1
jax: 0.10.0
libtpu: 0.0.40
codegen_flags: <defaults>
</compile_context>

<pallas_src>
import jax
import jax.numpy as jnp
from jax.experimental import pallas as pl
from jax.experimental.pallas import tpu as pltpu

# ---------------------------------------------------------------------------
# Small synthetic configuration (stands in for roberta-large etc.)
# ---------------------------------------------------------------------------
B, S = 2, 8              # batch, sequence length
D, H, F = 128, 4, 512    # hidden (lane-dense multiple of 128), heads, FFN width
HD = D // H
C = 7                    # clsNum
CP = 128                 # classifier logits padded to a full lane tile (sliced to C on host)
OUT_PAD = 8              # sublane padding of the per-batch logits row
V = 100                  # vocab size
L = 2                    # encoder layers
LAST = True              # ERC_model(last=True): pool the final token's hidden state
POOL_ROW = S - 1 if LAST else 0
EPS = 1e-5


def _layer_norm(x, g, b):
    mu = jnp.mean(x, axis=-1, keepdims=True)
    var = jnp.mean((x - mu) ** 2, axis=-1, keepdims=True)
    return (x - mu) * jax.lax.rsqrt(var + EPS) * g + b


def _erf(x):
    # Abramowitz & Stegun 7.1.26 rational approximation (|err| < 1.5e-7): "exact" GELU
    # semantics without depending on lax.erf lowering inside Mosaic.
    p = 0.3275911
    a1, a2, a3, a4, a5 = 0.254829592, -0.284496736, 1.421413741, -1.453152027, 1.061405429
    ax = jnp.abs(x)
    t = 1.0 / (1.0 + p * ax)
    poly = ((((a5 * t + a4) * t + a3) * t + a2) * t + a1) * t
    y = 1.0 - poly * jnp.exp(-ax * ax)
    return jnp.where(x >= 0, y, -y)


def _gelu_exact(x):
    return 0.5 * x * (1.0 + _erf(x * 0.7071067811865476))


# ---------------------------------------------------------------------------
# Fused per-(batch, layer) kernel: embedding-LN init + encoder layer + classifier finalize
# ---------------------------------------------------------------------------
def erc_layer_kernel(x_ref, emb_g_ref, emb_b_ref,
                     wqkv_ref, bqkv_ref, wo_ref, bo_ref, g1_ref, b1_ref,
                     wff1_ref, bff1_ref, wff2_ref, bff2_ref, g2_ref, b2_ref,
                     wcls_ref, bcls_ref,
                     o_ref, h_scr):
    l = pl.program_id(1)
    scale = 1.0 / (HD ** 0.5)

    # --- first layer step for this batch element: embedding LayerNorm into resident scratch
    @pl.when(l == 0)
    def _():
        h_scr[...] = _layer_norm(x_ref[0], emb_g_ref[...], emb_b_ref[...])

    h = h_scr[...]                                   # (S, D) f32, resident across the L axis
    hb = h.astype(jnp.bfloat16)                      # single activation cast for the QKV matmul

    # --- attention: ONE fused (S, D) @ (D, 3D) QKV projection (lane-dense result)
    qkv = jnp.dot(hb, wqkv_ref[0],
                  preferred_element_type=jnp.float32) + bqkv_ref[0]      # (S, 3D) f32

    # Per-head score/context matmuls are inherently per-head; keep them f32 (no cast chatter).
    ctx_heads = []
    for hh in range(H):                              # static unroll, H = 4
        qh = qkv[:, hh * HD:(hh + 1) * HD]           # (S, HD)
        kh = qkv[:, D + hh * HD:D + (hh + 1) * HD]
        vh = qkv[:, 2 * D + hh * HD:2 * D + (hh + 1) * HD]
        s = jnp.einsum('qd,kd->qk', qh, kh,
                       preferred_element_type=jnp.float32) * scale       # (S, S), no mask needed
        s = s - jnp.max(s, axis=-1, keepdims=True)
        p = jnp.exp(s)
        p = p * pl.reciprocal(jnp.sum(p, axis=-1, keepdims=True), approx=True)
        ctx_heads.append(jnp.dot(p, vh, preferred_element_type=jnp.float32))   # (S, HD)
    ctx = jnp.concatenate(ctx_heads, axis=-1)        # (S, D): heads folded back onto lanes

    # --- output projection: ONE (S, D) @ (D, D) matmul (head reduction inside the MXU)
    attn = jnp.dot(ctx.astype(jnp.bfloat16), wo_ref[0],
                   preferred_element_type=jnp.float32) + bo_ref[0]       # (S, D)
    h1 = _layer_norm(h + attn, g1_ref[0], b1_ref[0])                     # post-LN (BERT/RoBERTa)

    # --- FFN
    ff = jnp.dot(h1.astype(jnp.bfloat16), wff1_ref[0],
                 preferred_element_type=jnp.float32) + bff1_ref[0]       # (S, F)
    ff = _gelu_exact(ff)
    ff = jnp.dot(ff.astype(jnp.bfloat16), wff2_ref[0],
                 preferred_element_type=jnp.float32) + bff2_ref[0]       # (S, D)
    h2 = _layer_norm(h1 + ff, g2_ref[0], b2_ref[0])
    h_scr[...] = h2

    # --- last layer: pool one token row + classifier; lane-dense padded (OUT_PAD, CP) store
    @pl.when(l == L - 1)
    def _():
        pooled = h2[POOL_ROW:POOL_ROW + 1, :]                            # (1, D)
        logits = jnp.dot(pooled.astype(jnp.bfloat16), wcls_ref[...],
                         preferred_element_type=jnp.float32) + bcls_ref[...]   # (1, CP)
        o_ref[0] = jnp.broadcast_to(logits, (OUT_PAD, CP))               # host reads row 0


# ---------------------------------------------------------------------------
# Wrapper
# ---------------------------------------------------------------------------
@jax.jit
def erc_forward(params, batch_input_tokens):
    # Embedding lookup + positional add as plain-JAX glue (gather has no Pallas win here).
    x = jnp.take(params["tok_emb"], batch_input_tokens, axis=0) + params["pos_emb"][None]
    x = x.astype(jnp.float32)                                            # (B, S, D)

    grid_spec = pltpu.PrefetchScalarGridSpec(
        num_scalar_prefetch=0,
        grid=(B, L),                      # batch parallel (megacore), layers sequential
        in_specs=[
            pl.BlockSpec((1, S, D), lambda b, l: (b, 0, 0)),       # x (embeddings)
            pl.BlockSpec((1, D), lambda b, l: (0, 0)),             # emb LN gamma
            pl.BlockSpec((1, D), lambda b, l: (0, 0)),             # emb LN beta
            pl.BlockSpec((1, D, 3 * D), lambda b, l: (l, 0, 0)),   # wqkv  (per-layer stream)
            pl.BlockSpec((1, 1, 3 * D), lambda b, l: (l, 0, 0)),   # bqkv
            pl.BlockSpec((1, D, D), lambda b, l: (l, 0, 0)),       # wo
            pl.BlockSpec((1, 1, D), lambda b, l: (l, 0, 0)),       # bo
            pl.BlockSpec((1, 1, D), lambda b, l: (l, 0, 0)),       # ln1 gamma
            pl.BlockSpec((1, 1, D), lambda b, l: (l, 0, 0)),       # ln1 beta
            pl.BlockSpec((1, D, F), lambda b, l: (l, 0, 0)),       # wff1
            pl.BlockSpec((1, 1, F), lambda b, l: (l, 0, 0)),       # bff1
            pl.BlockSpec((1, F, D), lambda b, l: (l, 0, 0)),       # wff2
            pl.BlockSpec((1, 1, D), lambda b, l: (l, 0, 0)),       # bff2
            pl.BlockSpec((1, 1, D), lambda b, l: (l, 0, 0)),       # ln2 gamma
            pl.BlockSpec((1, 1, D), lambda b, l: (l, 0, 0)),       # ln2 beta
            pl.BlockSpec((D, CP), lambda b, l: (0, 0)),            # classifier W (padded)
            pl.BlockSpec((1, CP), lambda b, l: (0, 0)),            # classifier bias (padded)
        ],
        out_specs=pl.BlockSpec((1, OUT_PAD, CP), lambda b, l: (b, 0, 0)),
        scratch_shapes=[pltpu.VMEM((S, D), jnp.float32)],          # resident hidden state
    )
    out = pl.pallas_call(
        erc_layer_kernel,
        out_shape=jax.ShapeDtypeStruct((B, OUT_PAD, CP), jnp.float32),
        grid_spec=grid_spec,
        compiler_params=pltpu.CompilerParams(
            dimension_semantics=("parallel", "arbitrary")),
    )(x, params["emb_g"], params["emb_b"],
      params["wqkv"], params["bqkv"], params["wo"], params["bo"],
      params["g1"], params["b1"],
      params["wff1"], params["bff1"], params["wff2"], params["bff2"],
      params["g2"], params["b2"],
      params["W"], params["Wb"])
    return out[:, 0, :C]                                           # slice padded logits -> (B, C)


# ---------------------------------------------------------------------------
# Pure-JAX f32 reference (same synthetic encoder, exact-division softmax)
# ---------------------------------------------------------------------------
def erc_ref(params, tokens):
    f32 = lambda a: jnp.asarray(a, jnp.float32)
    h = jnp.take(params["tok_emb"], tokens, axis=0) + params["pos_emb"][None]
    h = _layer_norm(h, params["emb_g"], params["emb_b"])
    for l in range(L):
        qkv = h @ f32(params["wqkv"][l]) + params["bqkv"][l]             # (B, S, 3D)
        q, k, v = qkv[..., :D], qkv[..., D:2 * D], qkv[..., 2 * D:]
        split = lambda t: t.reshape(B, S, H, HD).transpose(0, 2, 1, 3)   # (B, H, S, HD)
        q, k, v = split(q), split(k), split(v)
        s = jnp.einsum('bhqd,bhkd->bhqk', q, k) / (HD ** 0.5)
        p = jax.nn.softmax(s, axis=-1)
        ctx = jnp.einsum('bhqk,bhkd->bhqd', p, v).transpose(0, 2, 1, 3).reshape(B, S, D)
        attn = ctx @ f32(params["wo"][l]) + params["bo"][l]
        h1 = _layer_norm(h + attn, params["g1"][l], params["b1"][l])
        ff = _gelu_exact(h1 @ f32(params["wff1"][l]) + params["bff1"][l])
        ff = ff @ f32(params["wff2"][l]) + params["bff2"][l]
        h = _layer_norm(h1 + ff, params["g2"][l], params["b2"][l])
    pooled = h[:, POOL_ROW, :]                                           # (B, D)
    return pooled @ f32(params["W"])[:, :C] + params["Wb"][:, :C]


# ---------------------------------------------------------------------------
# Parameter init (deterministic, synthetic)
# ---------------------------------------------------------------------------
def init_params(key):
    # TODO(synk): real ERC_model loads pretrained HF encoder weights; these are synthetic.
    scl = 0.02
    keys = iter(jax.random.split(key, 16 * L + 16))

    def mat(shape):
        return (scl * jax.random.normal(next(keys), shape)).astype(jnp.float32)

    wqkv, bqkv, wo, bo = [], [], [], []
    g1, b1, wff1, bff1, wff2, bff2, g2, b2 = ([] for _ in range(8))
    for _ in range(L):
        wq, wk, wv = mat((D, D)), mat((D, D)), mat((D, D))
        wqkv.append(jnp.concatenate([wq, wk, wv], axis=1))               # (D, 3D) = [Q | K | V]
        bqkv.append(mat((1, 3 * D)))
        wo.append(mat((D, D)))
        bo.append(mat((1, D)))
        g1.append(1.0 + mat((1, D))); b1.append(mat((1, D)))
        wff1.append(mat((D, F))); bff1.append(mat((1, F)))
        wff2.append(mat((F, D))); bff2.append(mat((1, D)))
        g2.append(1.0 + mat((1, D))); b2.append(mat((1, D)))

    # classifier: self.W = nn.Linear(hiddenDim, clsNum) stored as (D, CP) lane-padded
    wcls = jnp.zeros((D, CP), jnp.float32).at[:, :C].set(mat((D, C)))
    bcls = jnp.zeros((1, CP), jnp.float32).at[:, :C].set(mat((1, C)))

    return {
        "tok_emb": mat((V, D)),
        "pos_emb": mat((S, D)),
        "emb_g": 1.0 + mat((1, D)),
        "emb_b": mat((1, D)),
        # stacked per-layer weights; matmul weights stored bf16 (f32 accumulation in-kernel)
        "wqkv": jnp.stack(wqkv).astype(jnp.bfloat16),   # (L, D, 3D)
        "bqkv": jnp.stack(bqkv),                        # (L, 1, 3D)
        "wo":   jnp.stack(wo).astype(jnp.bfloat16),     # (L, D, D)
        "bo":   jnp.stack(bo),                          # (L, 1, D)
        "g1":   jnp.stack(g1), "b1": jnp.stack(b1),
        "wff1": jnp.stack(wff1).astype(jnp.bfloat16),   # (L, D, F)
        "bff1": jnp.stack(bff1),
        "wff2": jnp.stack(wff2).astype(jnp.bfloat16),   # (L, F, D)
        "bff2": jnp.stack(bff2),
        "g2":   jnp.stack(g2), "b2": jnp.stack(b2),
        "W":  wcls.astype(jnp.bfloat16),                # (D, CP)
        "Wb": bcls,                                     # (1, CP)
    }


if __name__ == "__main__":
    # TODO(synk): padded batches would need a padding-aware attention mask and
    # last-valid-token pooling; this synthetic setup uses fixed-length sequences.
    key = jax.random.PRNGKey(0)
    key_tok, key_params = jax.random.split(key)
    batch_input_tokens = jax.random.randint(key_tok, (B, S), 0, V, dtype=jnp.int32)
    params = init_params(key_params)

    logits = jax.block_until_ready(erc_forward(params, batch_input_tokens))
    assert logits.shape == (B, C) and logits.dtype == jnp.float32
    assert bool(jnp.all(jnp.isfinite(logits)))

    # Tolerance-asserted pure-JAX reference (bf16 activation casts + approx reciprocal only).
    ref = erc_ref(params, batch_input_tokens)
    assert bool(jnp.allclose(logits, ref, atol=5e-2, rtol=0.0))

    print("KERNEL_OK")
</pallas_src>

<mosaic_0001>
module attributes {stable_mosaic.version = 11 : i64} {
  func.func @erc_layer_kernel(%arg0: i32, %arg1: i32, %arg2: memref<1x8x128xf32, #tpu.memory_space<vmem>>, %arg3: memref<1x128xf32, #tpu.memory_space<vmem>>, %arg4: memref<1x128xf32, #tpu.memory_space<vmem>>, %arg5: memref<1x128x384xbf16, #tpu.memory_space<vmem>>, %arg6: memref<1x1x384xf32, #tpu.memory_space<vmem>>, %arg7: memref<1x128x128xbf16, #tpu.memory_space<vmem>>, %arg8: memref<1x1x128xf32, #tpu.memory_space<vmem>>, %arg9: memref<1x1x128xf32, #tpu.memory_space<vmem>>, %arg10: memref<1x1x128xf32, #tpu.memory_space<vmem>>, %arg11: memref<1x128x512xbf16, #tpu.memory_space<vmem>>, %arg12: memref<1x1x512xf32, #tpu.memory_space<vmem>>, %arg13: memref<1x512x128xbf16, #tpu.memory_space<vmem>>, %arg14: memref<1x1x128xf32, #tpu.memory_space<vmem>>, %arg15: memref<1x1x128xf32, #tpu.memory_space<vmem>>, %arg16: memref<1x1x128xf32, #tpu.memory_space<vmem>>, %arg17: memref<128x128xbf16, #tpu.memory_space<vmem>>, %arg18: memref<1x128xf32, #tpu.memory_space<vmem>>, %arg19: memref<1x8x128xf32, #tpu.memory_space<vmem>>, %arg20: memref<8x128xf32, #tpu.memory_space<vmem>>) attributes {dimension_semantics = [#tpu.dimension_semantics<parallel>, #tpu.dimension_semantics<arbitrary>], iteration_bounds = array<i64: 2, 2>, scalar_prefetch = 0 : i64, scratch_operands = 1 : i64, tpu.core_type = #tpu.core_type<tc>, window_params = [{transform_indices = @transform_0, window_bounds = array<i64: 1, 8, 128>}, {pipeline_mode = #tpu.pipeline_mode<synchronous>, transform_indices = @transform_1, window_bounds = array<i64: 1, 128>}, {pipeline_mode = #tpu.pipeline_mode<synchronous>, transform_indices = @transform_2, window_bounds = array<i64: 1, 128>}, {transform_indices = @transform_3, window_bounds = array<i64: 1, 128, 384>}, {transform_indices = @transform_4, window_bounds = array<i64: 1, 1, 384>}, {transform_indices = @transform_5, window_bounds = array<i64: 1, 128, 128>}, {transform_indices = @transform_6, window_bounds = array<i64: 1, 1, 128>}, {transform_indices = @transform_7, window_bounds = array<i64: 1, 1, 128>}, {transform_indices = @transform_8, window_bounds = array<i64: 1, 1, 128>}, {transform_indices = @transform_9, window_bounds = array<i64: 1, 128, 512>}, {transform_indices = @transform_10, window_bounds = array<i64: 1, 1, 512>}, {transform_indices = @transform_11, window_bounds = array<i64: 1, 512, 128>}, {transform_indices = @transform_12, window_bounds = array<i64: 1, 1, 128>}, {transform_indices = @transform_13, window_bounds = array<i64: 1, 1, 128>}, {transform_indices = @transform_14, window_bounds = array<i64: 1, 1, 128>}, {pipeline_mode = #tpu.pipeline_mode<synchronous>, transform_indices = @transform_15, window_bounds = array<i64: 128, 128>}, {pipeline_mode = #tpu.pipeline_mode<synchronous>, transform_indices = @transform_16, window_bounds = array<i64: 1, 128>}, {transform_indices = @transform_17, window_bounds = array<i64: 1, 8, 128>}]} {
    %c0_i32 = arith.constant 0 : i32
    %0 = arith.cmpi eq, %arg1, %c0_i32 : i32
    %1 = arith.extui %0 : i1 to i32
    %c0_i32_0 = arith.constant 0 : i32
    %2 = arith.cmpi ne, %1, %c0_i32_0 : i32
    scf.if %2 {
      %c0_89 = arith.constant 0 : index
      %c0_90 = arith.constant 0 : index
      %c0_91 = arith.constant 0 : index
      %203 = vector.load %arg2[%c0_89, %c0_90, %c0_91] : memref<1x8x128xf32, #tpu.memory_space<vmem>>, vector<1x8x128xf32>
      %204 = vector.shape_cast %203 : vector<1x8x128xf32> to vector<8x128xf32>
      %c0_92 = arith.constant 0 : index
      %c0_93 = arith.constant 0 : index
      %205 = vector.load %arg3[%c0_92, %c0_93] : memref<1x128xf32, #tpu.memory_space<vmem>>, vector<1x128xf32>
      %c0_94 = arith.constant 0 : index
      %c0_95 = arith.constant 0 : index
      %206 = vector.load %arg4[%c0_94, %c0_95] : memref<1x128xf32, #tpu.memory_space<vmem>>, vector<1x128xf32>
      %cst_96 = arith.constant dense<0.000000e+00> : vector<8xf32>
      %207 = vector.multi_reduction <add>, %204, %cst_96 [1] : vector<8x128xf32> to vector<8xf32>
      %208 = vector.shape_cast %207 : vector<8xf32> to vector<8x1xf32>
      %cst_97 = arith.constant 1.280000e+02 : f32
      %209 = vector.broadcast %cst_97 : f32 to vector<8x1xf32>
      %210 = arith.divf %208, %209 : vector<8x1xf32>
      %211 = vector.broadcast %210 : vector<8x1xf32> to vector<8x128xf32>
      %212 = arith.subf %204, %211 : vector<8x128xf32>
      %213 = arith.mulf %212, %212 : vector<8x128xf32>
      %cst_98 = arith.constant dense<0.000000e+00> : vector<8xf32>
      %214 = vector.multi_reduction <add>, %213, %cst_98 [1] : vector<8x128xf32> to vector<8xf32>
      %215 = vector.shape_cast %214 : vector<8xf32> to vector<8x1xf32>
      %cst_99 = arith.constant 1.280000e+02 : f32
      %216 = vector.broadcast %cst_99 : f32 to vector<8x1xf32>
      %217 = arith.divf %215, %216 : vector<8x1xf32>
      %218 = vector.broadcast %210 : vector<8x1xf32> to vector<8x128xf32>
      %219 = arith.subf %204, %218 : vector<8x128xf32>
      %cst_100 = arith.constant 9.99999974E-6 : f32
      %220 = vector.broadcast %cst_100 : f32 to vector<8x1xf32>
      %221 = arith.addf %217, %220 : vector<8x1xf32>
      %222 = math.rsqrt %221 : vector<8x1xf32>
      %223 = vector.broadcast %222 : vector<8x1xf32> to vector<8x128xf32>
      %224 = arith.mulf %219, %223 : vector<8x128xf32>
      %225 = vector.broadcast %205 : vector<1x128xf32> to vector<8x128xf32>
      %226 = arith.mulf %224, %225 : vector<8x128xf32>
      %227 = vector.broadcast %206 : vector<1x128xf32> to vector<8x128xf32>
      %228 = arith.addf %226, %227 : vector<8x128xf32>
      %c0_101 = arith.constant 0 : index
      %c0_102 = arith.constant 0 : index
      %229 = vector.load %arg20[%c0_101, %c0_102] : memref<8x128xf32, #tpu.memory_space<vmem>>, vector<8x128xf32>
      tpu.vector_store %arg20[%c0_101, %c0_102], %228 {strides = array<i32>} : memref<8x128xf32, #tpu.memory_space<vmem>>, vector<8x128xf32>,
    } else {
    }
    %c0 = arith.constant 0 : index
    %c0_1 = arith.constant 0 : index
    %3 = vector.load %arg20[%c0, %c0_1] : memref<8x128xf32, #tpu.memory_space<vmem>>, vector<8x128xf32>
    %4 = arith.truncf %3 : vector<8x128xf32> to vector<8x128xbf16>
    %c0_2 = arith.constant 0 : index
    %c0_3 = arith.constant 0 : index
    %c0_4 = arith.constant 0 : index
    %5 = vector.load %arg5[%c0_2, %c0_3, %c0_4] : memref<1x128x384xbf16, #tpu.memory_space<vmem>>, vector<1x128x384xbf16>
    %6 = vector.shape_cast %5 : vector<1x128x384xbf16> to vector<128x384xbf16>
    %cst = arith.constant dense<0.000000e+00> : vector<8x384xf32>
    %7 = tpu.matmul %4, %6, %cst {dimension_numbers = #tpu.dot_dimension_numbers<[1], [0], [0], [1], [0, 0, 1, 1], [], []>} : vector<8x128xbf16>, vector<128x384xbf16>, vector<8x384xf32> -> vector<8x384xf32>
    %c0_5 = arith.constant 0 : index
    %c0_6 = arith.constant 0 : index
    %c0_7 = arith.constant 0 : index
    %8 = vector.load %arg6[%c0_5, %c0_6, %c0_7] : memref<1x1x384xf32, #tpu.memory_space<vmem>>, vector<1x1x384xf32>
    %9 = vector.shape_cast %8 : vector<1x1x384xf32> to vector<1x384xf32>
    %10 = vector.broadcast %9 : vector<1x384xf32> to vector<8x384xf32>
    %11 = arith.addf %7, %10 : vector<8x384xf32>
    %12 = vector.extract_strided_slice %11 {offsets = [0, 0], sizes = [8, 32], strides = [1, 1]} : vector<8x384xf32> to vector<8x32xf32>
    %13 = vector.extract_strided_slice %11 {offsets = [0, 128], sizes = [8, 32], strides = [1, 1]} : vector<8x384xf32> to vector<8x32xf32>
    %14 = vector.extract_strided_slice %11 {offsets = [0, 256], sizes = [8, 32], strides = [1, 1]} : vector<8x384xf32> to vector<8x32xf32>
    "tpu.trace_start"() <{level = 10 : i32, message = "qd,kd->qk"}> : () -> ()
    %cst_8 = arith.constant dense<0.000000e+00> : vector<8x8xf32>
    %15 = tpu.matmul %12, %13, %cst_8 {dimension_numbers = #tpu.dot_dimension_numbers<[1], [1], [0], [0], [0, 0, 1, 0], [], []>} : vector<8x32xf32>, vector<8x32xf32>, vector<8x8xf32> -> vector<8x8xf32>
    "tpu.trace_stop"() : () -> ()
    %cst_9 = arith.constant 0.176776692 : f32
    %16 = vector.broadcast %cst_9 : f32 to vector<8x8xf32>
    %17 = arith.mulf %15, %16 : vector<8x8xf32>
    %cst_10 = arith.constant dense<0xFF800000> : vector<8xf32>
    %18 = vector.multi_reduction <maximumf>, %17, %cst_10 [1] : vector<8x8xf32> to vector<8xf32>
    %19 = vector.shape_cast %18 : vector<8xf32> to vector<8x1xf32>
    %20 = vector.broadcast %19 : vector<8x1xf32> to vector<8x8xf32>
    %21 = arith.subf %17, %20 : vector<8x8xf32>
    %22 = math.exp %21 : vector<8x8xf32>
    %cst_11 = arith.constant dense<0.000000e+00> : vector<8xf32>
    %23 = vector.multi_reduction <add>, %22, %cst_11 [1] : vector<8x8xf32> to vector<8xf32>
    %24 = vector.shape_cast %23 : vector<8xf32> to vector<8x1xf32>
    %25 = tpu.reciprocal %24 {approx = true} : vector<8x1xf32> -> vector<8x1xf32>
    %26 = vector.broadcast %25 : vector<8x1xf32> to vector<8x8xf32>
    %27 = arith.mulf %22, %26 : vector<8x8xf32>
    %cst_12 = arith.constant dense<0.000000e+00> : vector<8x32xf32>
    %28 = tpu.matmul %27, %14, %cst_12 {dimension_numbers = #tpu.dot_dimension_numbers<[1], [0], [0], [1], [0, 0, 1, 1], [], []>} : vector<8x8xf32>, vector<8x32xf32>, vector<8x32xf32> -> vector<8x32xf32>
    %29 = vector.extract_strided_slice %11 {offsets = [0, 32], sizes = [8, 32], strides = [1, 1]} : vector<8x384xf32> to vector<8x32xf32>
    %30 = vector.extract_strided_slice %11 {offsets = [0, 160], sizes = [8, 32], strides = [1, 1]} : vector<8x384xf32> to vector<8x32xf32>
    %31 = vector.extract_strided_slice %11 {offsets = [0, 288], sizes = [8, 32], strides = [1, 1]} : vector<8x384xf32> to vector<8x32xf32>
    "tpu.trace_start"() <{level = 10 : i32, message = "qd,kd->qk"}> : () -> ()
    %cst_13 = arith.constant dense<0.000000e+00> : vector<8x8xf32>
    %32 = tpu.matmul %29, %30, %cst_13 {dimension_numbers = #tpu.dot_dimension_numbers<[1], [1], [0], [0], [0, 0, 1, 0], [], []>} : vector<8x32xf32>, vector<8x32xf32>, vector<8x8xf32> -> vector<8x8xf32>
    "tpu.trace_stop"() : () -> ()
    %cst_14 = arith.constant 0.176776692 : f32
    %33 = vector.broadcast %cst_14 : f32 to vector<8x8xf32>
    %34 = arith.mulf %32, %33 : vector<8x8xf32>
    %cst_15 = arith.constant dense<0xFF800000> : vector<8xf32>
    %35 = vector.multi_reduction <maximumf>, %34, %cst_15 [1] : vector<8x8xf32> to vector<8xf32>
    %36 = vector.shape_cast %35 : vector<8xf32> to vector<8x1xf32>
    %37 = vector.broadcast %36 : vector<8x1xf32> to vector<8x8xf32>
    %38 = arith.subf %34, %37 : vector<8x8xf32>
    %39 = math.exp %38 : vector<8x8xf32>
    %cst_16 = arith.constant dense<0.000000e+00> : vector<8xf32>
    %40 = vector.multi_reduction <add>, %39, %cst_16 [1] : vector<8x8xf32> to vector<8xf32>
    %41 = vector.shape_cast %40 : vector<8xf32> to vector<8x1xf32>
    %42 = tpu.reciprocal %41 {approx = true} : vector<8x1xf32> -> vector<8x1xf32>
    %43 = vector.broadcast %42 : vector<8x1xf32> to vector<8x8xf32>
    %44 = arith.mulf %39, %43 : vector<8x8xf32>
    %cst_17 = arith.constant dense<0.000000e+00> : vector<8x32xf32>
    %45 = tpu.matmul %44, %31, %cst_17 {dimension_numbers = #tpu.dot_dimension_numbers<[1], [0], [0], [1], [0, 0, 1, 1], [], []>} : vector<8x8xf32>, vector<8x32xf32>, vector<8x32xf32> -> vector<8x32xf32>
    %46 = vector.extract_strided_slice %11 {offsets = [0, 64], sizes = [8, 32], strides = [1, 1]} : vector<8x384xf32> to vector<8x32xf32>
    %47 = vector.extract_strided_slice %11 {offsets = [0, 192], sizes = [8, 32], strides = [1, 1]} : vector<8x384xf32> to vector<8x32xf32>
    %48 = vector.extract_strided_slice %11 {offsets = [0, 320], sizes = [8, 32], strides = [1, 1]} : vector<8x384xf32> to vector<8x32xf32>
    "tpu.trace_start"() <{level = 10 : i32, message = "qd,kd->qk"}> : () -> ()
    %cst_18 = arith.constant dense<0.000000e+00> : vector<8x8xf32>
    %49 = tpu.matmul %46, %47, %cst_18 {dimension_numbers = #tpu.dot_dimension_numbers<[1], [1], [0], [0], [0, 0, 1, 0], [], []>} : vector<8x32xf32>, vector<8x32xf32>, vector<8x8xf32> -> vector<8x8xf32>
    "tpu.trace_stop"() : () -> ()
    %cst_19 = arith.constant 0.176776692 : f32
    %50 = vector.broadcast %cst_19 : f32 to vector<8x8xf32>
    %51 = arith.mulf %49, %50 : vector<8x8xf32>
    %cst_20 = arith.constant dense<0xFF800000> : vector<8xf32>
    %52 = vector.multi_reduction <maximumf>, %51, %cst_20 [1] : vector<8x8xf32> to vector<8xf32>
    %53 = vector.shape_cast %52 : vector<8xf32> to vector<8x1xf32>
    %54 = vector.broadcast %53 : vector<8x1xf32> to vector<8x8xf32>
    %55 = arith.subf %51, %54 : vector<8x8xf32>
    %56 = math.exp %55 : vector<8x8xf32>
    %cst_21 = arith.constant dense<0.000000e+00> : vector<8xf32>
    %57 = vector.multi_reduction <add>, %56, %cst_21 [1] : vector<8x8xf32> to vector<8xf32>
    %58 = vector.shape_cast %57 : vector<8xf32> to vector<8x1xf32>
    %59 = tpu.reciprocal %58 {approx = true} : vector<8x1xf32> -> vector<8x1xf32>
    %60 = vector.broadcast %59 : vector<8x1xf32> to vector<8x8xf32>
    %61 = arith.mulf %56, %60 : vector<8x8xf32>
    %cst_22 = arith.constant dense<0.000000e+00> : vector<8x32xf32>
    %62 = tpu.matmul %61, %48, %cst_22 {dimension_numbers = #tpu.dot_dimension_numbers<[1], [0], [0], [1], [0, 0, 1, 1], [], []>} : vector<8x8xf32>, vector<8x32xf32>, vector<8x32xf32> -> vector<8x32xf32>
    %63 = vector.extract_strided_slice %11 {offsets = [0, 96], sizes = [8, 32], strides = [1, 1]} : vector<8x384xf32> to vector<8x32xf32>
    %64 = vector.extract_strided_slice %11 {offsets = [0, 224], sizes = [8, 32], strides = [1, 1]} : vector<8x384xf32> to vector<8x32xf32>
    %65 = vector.extract_strided_slice %11 {offsets = [0, 352], sizes = [8, 32], strides = [1, 1]} : vector<8x384xf32> to vector<8x32xf32>
    "tpu.trace_start"() <{level = 10 : i32, message = "qd,kd->qk"}> : () -> ()
    %cst_23 = arith.constant dense<0.000000e+00> : vector<8x8xf32>
    %66 = tpu.matmul %63, %64, %cst_23 {dimension_numbers = #tpu.dot_dimension_numbers<[1], [1], [0], [0], [0, 0, 1, 0], [], []>} : vector<8x32xf32>, vector<8x32xf32>, vector<8x8xf32> -> vector<8x8xf32>
    "tpu.trace_stop"() : () -> ()
    %cst_24 = arith.constant 0.176776692 : f32
    %67 = vector.broadcast %cst_24 : f32 to vector<8x8xf32>
    %68 = arith.mulf %66, %67 : vector<8x8xf32>
    %cst_25 = arith.constant dense<0xFF800000> : vector<8xf32>
    %69 = vector.multi_reduction <maximumf>, %68, %cst_25 [1] : vector<8x8xf32> to vector<8xf32>
    %70 = vector.shape_cast %69 : vector<8xf32> to vector<8x1xf32>
    %71 = vector.broadcast %70 : vector<8x1xf32> to vector<8x8xf32>
    %72 = arith.subf %68, %71 : vector<8x8xf32>
    %73 = math.exp %72 : vector<8x8xf32>
    %cst_26 = arith.constant dense<0.000000e+00> : vector<8xf32>
    %74 = vector.multi_reduction <add>, %73, %cst_26 [1] : vector<8x8xf32> to vector<8xf32>
    %75 = vector.shape_cast %74 : vector<8xf32> to vector<8x1xf32>
    %76 = tpu.reciprocal %75 {approx = true} : vector<8x1xf32> -> vector<8x1xf32>
    %77 = vector.broadcast %76 : vector<8x1xf32> to vector<8x8xf32>
    %78 = arith.mulf %73, %77 : vector<8x8xf32>
    %cst_27 = arith.constant dense<0.000000e+00> : vector<8x32xf32>
    %79 = tpu.matmul %78, %65, %cst_27 {dimension_numbers = #tpu.dot_dimension_numbers<[1], [0], [0], [1], [0, 0, 1, 1], [], []>} : vector<8x8xf32>, vector<8x32xf32>, vector<8x32xf32> -> vector<8x32xf32>
    %80 = tpu.concatenate %28, %45, %62, %79 in 1 : vector<8x32xf32>, vector<8x32xf32>, vector<8x32xf32>, vector<8x32xf32> -> vector<8x128xf32>
    %81 = arith.truncf %80 : vector<8x128xf32> to vector<8x128xbf16>
    %c0_28 = arith.constant 0 : index
    %c0_29 = arith.constant 0 : index
    %c0_30 = arith.constant 0 : index
    %82 = vector.load %arg7[%c0_28, %c0_29, %c0_30] : memref<1x128x128xbf16, #tpu.memory_space<vmem>>, vector<1x128x128xbf16>
    %83 = vector.shape_cast %82 : vector<1x128x128xbf16> to vector<128x128xbf16>
    %cst_31 = arith.constant dense<0.000000e+00> : vector<8x128xf32>
    %84 = tpu.matmul %81, %83, %cst_31 {dimension_numbers = #tpu.dot_dimension_numbers<[1], [0], [0], [1], [0, 0, 1, 1], [], []>} : vector<8x128xbf16>, vector<128x128xbf16>, vector<8x128xf32> -> vector<8x128xf32>
    %c0_32 = arith.constant 0 : index
    %c0_33 = arith.constant 0 : index
    %c0_34 = arith.constant 0 : index
    %85 = vector.load %arg8[%c0_32, %c0_33, %c0_34] : memref<1x1x128xf32, #tpu.memory_space<vmem>>, vector<1x1x128xf32>
    %86 = vector.shape_cast %85 : vector<1x1x128xf32> to vector<1x128xf32>
    %87 = vector.broadcast %86 : vector<1x128xf32> to vector<8x128xf32>
    %88 = arith.addf %84, %87 : vector<8x128xf32>
    %89 = arith.addf %3, %88 : vector<8x128xf32>
    %c0_35 = arith.constant 0 : index
    %c0_36 = arith.constant 0 : index
    %c0_37 = arith.constant 0 : index
    %90 = vector.load %arg9[%c0_35, %c0_36, %c0_37] : memref<1x1x128xf32, #tpu.memory_space<vmem>>, vector<1x1x128xf32>
    %91 = vector.shape_cast %90 : vector<1x1x128xf32> to vector<1x128xf32>
    %c0_38 = arith.constant 0 : index
    %c0_39 = arith.constant 0 : index
    %c0_40 = arith.constant 0 : index
    %92 = vector.load %arg10[%c0_38, %c0_39, %c0_40] : memref<1x1x128xf32, #tpu.memory_space<vmem>>, vector<1x1x128xf32>
    %93 = vector.shape_cast %92 : vector<1x1x128xf32> to vector<1x128xf32>
    %cst_41 = arith.constant dense<0.000000e+00> : vector<8xf32>
    %94 = vector.multi_reduction <add>, %89, %cst_41 [1] : vector<8x128xf32> to vector<8xf32>
    %95 = vector.shape_cast %94 : vector<8xf32> to vector<8x1xf32>
    %cst_42 = arith.constant 1.280000e+02 : f32
    %96 = vector.broadcast %cst_42 : f32 to vector<8x1xf32>
    %97 = arith.divf %95, %96 : vector<8x1xf32>
    %98 = vector.broadcast %97 : vector<8x1xf32> to vector<8x128xf32>
    %99 = arith.subf %89, %98 : vector<8x128xf32>
    %100 = arith.mulf %99, %99 : vector<8x128xf32>
    %cst_43 = arith.constant dense<0.000000e+00> : vector<8xf32>
    %101 = vector.multi_reduction <add>, %100, %cst_43 [1] : vector<8x128xf32> to vector<8xf32>
    %102 = vector.shape_cast %101 : vector<8xf32> to vector<8x1xf32>
    %cst_44 = arith.constant 1.280000e+02 : f32
    %103 = vector.broadcast %cst_44 : f32 to vector<8x1xf32>
    %104 = arith.divf %102, %103 : vector<8x1xf32>
    %105 = vector.broadcast %97 : vector<8x1xf32> to vector<8x128xf32>
    %106 = arith.subf %89, %105 : vector<8x128xf32>
    %cst_45 = arith.constant 9.99999974E-6 : f32
    %107 = vector.broadcast %cst_45 : f32 to vector<8x1xf32>
    %108 = arith.addf %104, %107 : vector<8x1xf32>
    %109 = math.rsqrt %108 : vector<8x1xf32>
    %110 = vector.broadcast %109 : vector<8x1xf32> to vector<8x128xf32>
    %111 = arith.mulf %106, %110 : vector<8x128xf32>
    %112 = vector.broadcast %91 : vector<1x128xf32> to vector<8x128xf32>
    %113 = arith.mulf %111, %112 : vector<8x128xf32>
    %114 = vector.broadcast %93 : vector<1x128xf32> to vector<8x128xf32>
    %115 = arith.addf %113, %114 : vector<8x128xf32>
    %116 = arith.truncf %115 : vector<8x128xf32> to vector<8x128xbf16>
    %c0_46 = arith.constant 0 : index
    %c0_47 = arith.constant 0 : index
    %c0_48 = arith.constant 0 : index
    %117 = vector.load %arg11[%c0_46, %c0_47, %c0_48] : memref<1x128x512xbf16, #tpu.memory_space<vmem>>, vector<1x128x512xbf16>
    %118 = vector.shape_cast %117 : vector<1x128x512xbf16> to vector<128x512xbf16>
    %cst_49 = arith.constant dense<0.000000e+00> : vector<8x512xf32>
    %119 = tpu.matmul %116, %118, %cst_49 {dimension_numbers = #tpu.dot_dimension_numbers<[1], [0], [0], [1], [0, 0, 1, 1], [], []>} : vector<8x128xbf16>, vector<128x512xbf16>, vector<8x512xf32> -> vector<8x512xf32>
    %c0_50 = arith.constant 0 : index
    %c0_51 = arith.constant 0 : index
    %c0_52 = arith.constant 0 : index
    %120 = vector.load %arg12[%c0_50, %c0_51, %c0_52] : memref<1x1x512xf32, #tpu.memory_space<vmem>>, vector<1x1x512xf32>
    %121 = vector.shape_cast %120 : vector<1x1x512xf32> to vector<1x512xf32>
    %122 = vector.broadcast %121 : vector<1x512xf32> to vector<8x512xf32>
    %123 = arith.addf %119, %122 : vector<8x512xf32>
    %cst_53 = arith.constant 5.000000e-01 : f32
    %124 = vector.broadcast %cst_53 : f32 to vector<8x512xf32>
    %125 = arith.mulf %124, %123 : vector<8x512xf32>
    %cst_54 = arith.constant 0.707106769 : f32
    %126 = vector.broadcast %cst_54 : f32 to vector<8x512xf32>
    %127 = arith.mulf %123, %126 : vector<8x512xf32>
    %128 = math.absf %127 : vector<8x512xf32>
    %cst_55 = arith.constant 0.327591091 : f32
    %129 = vector.broadcast %cst_55 : f32 to vector<8x512xf32>
    %130 = arith.mulf %129, %128 : vector<8x512xf32>
    %cst_56 = arith.constant 1.000000e+00 : f32
    %131 = vector.broadcast %cst_56 : f32 to vector<8x512xf32>
    %132 = arith.addf %131, %130 : vector<8x512xf32>
    %cst_57 = arith.constant 1.000000e+00 : f32
    %133 = vector.broadcast %cst_57 : f32 to vector<8x512xf32>
    %134 = arith.divf %133, %132 : vector<8x512xf32>
    %cst_58 = arith.constant 1.06140542 : f32
    %135 = vector.broadcast %cst_58 : f32 to vector<8x512xf32>
    %136 = arith.mulf %135, %134 : vector<8x512xf32>
    %cst_59 = arith.constant -1.45315206 : f32
    %137 = vector.broadcast %cst_59 : f32 to vector<8x512xf32>
    %138 = arith.addf %136, %137 : vector<8x512xf32>
    %139 = arith.mulf %138, %134 : vector<8x512xf32>
    %cst_60 = arith.constant 1.42141378 : f32
    %140 = vector.broadcast %cst_60 : f32 to vector<8x512xf32>
    %141 = arith.addf %139, %140 : vector<8x512xf32>
    %142 = arith.mulf %141, %134 : vector<8x512xf32>
    %cst_61 = arith.constant -0.284496725 : f32
    %143 = vector.broadcast %cst_61 : f32 to vector<8x512xf32>
    %144 = arith.addf %142, %143 : vector<8x512xf32>
    %145 = arith.mulf %144, %134 : vector<8x512xf32>
    %cst_62 = arith.constant 0.254829586 : f32
    %146 = vector.broadcast %cst_62 : f32 to vector<8x512xf32>
    %147 = arith.addf %145, %146 : vector<8x512xf32>
    %148 = arith.mulf %147, %134 : vector<8x512xf32>
    %cst_63 = arith.constant 0.000000e+00 : f32
    %149 = vector.broadcast %cst_63 : f32 to vector<8x512xf32>
    %150 = arith.subf %149, %128 : vector<8x512xf32>
    %151 = arith.mulf %150, %128 : vector<8x512xf32>
    %152 = math.exp %151 : vector<8x512xf32>
    %153 = arith.mulf %148, %152 : vector<8x512xf32>
    %cst_64 = arith.constant 1.000000e+00 : f32
    %154 = vector.broadcast %cst_64 : f32 to vector<8x512xf32>
    %155 = arith.subf %154, %153 : vector<8x512xf32>
    %cst_65 = arith.constant 0.000000e+00 : f32
    %156 = vector.broadcast %cst_65 : f32 to vector<8x512xf32>
    %157 = arith.cmpf oge, %127, %156 : vector<8x512xf32>
    %cst_66 = arith.constant 0.000000e+00 : f32
    %158 = vector.broadcast %cst_66 : f32 to vector<8x512xf32>
    %159 = arith.subf %158, %155 : vector<8x512xf32>
    %160 = arith.select %157, %155, %159 : vector<8x512xi1>, vector<8x512xf32>
    %cst_67 = arith.constant 1.000000e+00 : f32
    %161 = vector.broadcast %cst_67 : f32 to vector<8x512xf32>
    %162 = arith.addf %161, %160 : vector<8x512xf32>
    %163 = arith.mulf %125, %162 : vector<8x512xf32>
    %164 = arith.truncf %163 : vector<8x512xf32> to vector<8x512xbf16>
    %c0_68 = arith.constant 0 : index
    %c0_69 = arith.constant 0 : index
    %c0_70 = arith.constant 0 : index
    %165 = vector.load %arg13[%c0_68, %c0_69, %c0_70] : memref<1x512x128xbf16, #tpu.memory_space<vmem>>, vector<1x512x128xbf16>
    %166 = vector.shape_cast %165 : vector<1x512x128xbf16> to vector<512x128xbf16>
    %cst_71 = arith.constant dense<0.000000e+00> : vector<8x128xf32>
    %167 = tpu.matmul %164, %166, %cst_71 {dimension_numbers = #tpu.dot_dimension_numbers<[1], [0], [0], [1], [0, 0, 1, 1], [], []>} : vector<8x512xbf16>, vector<512x128xbf16>, vector<8x128xf32> -> vector<8x128xf32>
    %c0_72 = arith.constant 0 : index
    %c0_73 = arith.constant 0 : index
    %c0_74 = arith.constant 0 : index
    %168 = vector.load %arg14[%c0_72, %c0_73, %c0_74] : memref<1x1x128xf32, #tpu.memory_space<vmem>>, vector<1x1x128xf32>
    %169 = vector.shape_cast %168 : vector<1x1x128xf32> to vector<1x128xf32>
    %170 = vector.broadcast %169 : vector<1x128xf32> to vector<8x128xf32>
    %171 = arith.addf %167, %170 : vector<8x128xf32>
    %172 = arith.addf %115, %171 : vector<8x128xf32>
    %c0_75 = arith.constant 0 : index
    %c0_76 = arith.constant 0 : index
    %c0_77 = arith.constant 0 : index
    %173 = vector.load %arg15[%c0_75, %c0_76, %c0_77] : memref<1x1x128xf32, #tpu.memory_space<vmem>>, vector<1x1x128xf32>
    %174 = vector.shape_cast %173 : vector<1x1x128xf32> to vector<1x128xf32>
    %c0_78 = arith.constant 0 : index
    %c0_79 = arith.constant 0 : index
    %c0_80 = arith.constant 0 : index
    %175 = vector.load %arg16[%c0_78, %c0_79, %c0_80] : memref<1x1x128xf32, #tpu.memory_space<vmem>>, vector<1x1x128xf32>
    %176 = vector.shape_cast %175 : vector<1x1x128xf32> to vector<1x128xf32>
    %cst_81 = arith.constant dense<0.000000e+00> : vector<8xf32>
    %177 = vector.multi_reduction <add>, %172, %cst_81 [1] : vector<8x128xf32> to vector<8xf32>
    %178 = vector.shape_cast %177 : vector<8xf32> to vector<8x1xf32>
    %cst_82 = arith.constant 1.280000e+02 : f32
    %179 = vector.broadcast %cst_82 : f32 to vector<8x1xf32>
    %180 = arith.divf %178, %179 : vector<8x1xf32>
    %181 = vector.broadcast %180 : vector<8x1xf32> to vector<8x128xf32>
    %182 = arith.subf %172, %181 : vector<8x128xf32>
    %183 = arith.mulf %182, %182 : vector<8x128xf32>
    %cst_83 = arith.constant dense<0.000000e+00> : vector<8xf32>
    %184 = vector.multi_reduction <add>, %183, %cst_83 [1] : vector<8x128xf32> to vector<8xf32>
    %185 = vector.shape_cast %184 : vector<8xf32> to vector<8x1xf32>
    %cst_84 = arith.constant 1.280000e+02 : f32
    %186 = vector.broadcast %cst_84 : f32 to vector<8x1xf32>
    %187 = arith.divf %185, %186 : vector<8x1xf32>
    %188 = vector.broadcast %180 : vector<8x1xf32> to vector<8x128xf32>
    %189 = arith.subf %172, %188 : vector<8x128xf32>
    %cst_85 = arith.constant 9.99999974E-6 : f32
    %190 = vector.broadcast %cst_85 : f32 to vector<8x1xf32>
    %191 = arith.addf %187, %190 : vector<8x1xf32>
    %192 = math.rsqrt %191 : vector<8x1xf32>
    %193 = vector.broadcast %192 : vector<8x1xf32> to vector<8x128xf32>
    %194 = arith.mulf %189, %193 : vector<8x128xf32>
    %195 = vector.broadcast %174 : vector<1x128xf32> to vector<8x128xf32>
    %196 = arith.mulf %194, %195 : vector<8x128xf32>
    %197 = vector.broadcast %176 : vector<1x128xf32> to vector<8x128xf32>
    %198 = arith.addf %196, %197 : vector<8x128xf32>
    %c0_86 = arith.constant 0 : index
    %c0_87 = arith.constant 0 : index
    %199 = vector.load %arg20[%c0_86, %c0_87] : memref<8x128xf32, #tpu.memory_space<vmem>>, vector<8x128xf32>
    tpu.vector_store %arg20[%c0_86, %c0_87], %198 {strides = array<i32>} : memref<8x128xf32, #tpu.memory_space<vmem>>, vector<8x128xf32>,
    %c1_i32 = arith.constant 1 : i32
    %200 = arith.cmpi eq, %arg1, %c1_i32 : i32
    %201 = arith.extui %200 : i1 to i32
    %c0_i32_88 = arith.constant 0 : i32
    %202 = arith.cmpi ne, %201, %c0_i32_88 : i32
    scf.if %202 {
      %203 = vector.extract_strided_slice %198 {offsets = [7, 0], sizes = [1, 128], strides = [1, 1]} : vector<8x128xf32> to vector<1x128xf32>
      %204 = arith.truncf %203 : vector<1x128xf32> to vector<1x128xbf16>
      %c0_89 = arith.constant 0 : index
      %c0_90 = arith.constant 0 : index
      %205 = vector.load %arg17[%c0_89, %c0_90] : memref<128x128xbf16, #tpu.memory_space<vmem>>, vector<128x128xbf16>
      %cst_91 = arith.constant dense<0.000000e+00> : vector<1x128xf32>
      %206 = tpu.matmul %204, %205, %cst_91 {dimension_numbers = #tpu.dot_dimension_numbers<[1], [0], [0], [1], [0, 0, 1, 1], [], []>} : vector<1x128xbf16>, vector<128x128xbf16>, vector<1x128xf32> -> vector<1x128xf32>
      %c0_92 = arith.constant 0 : index
      %c0_93 = arith.constant 0 : index
      %207 = vector.load %arg18[%c0_92, %c0_93] : memref<1x128xf32, #tpu.memory_space<vmem>>, vector<1x128xf32>
      %208 = arith.addf %206, %207 : vector<1x128xf32>
      %209 = vector.shape_cast %208 : vector<1x128xf32> to vector<1x128xf32>
      %210 = vector.broadcast %209 : vector<1x128xf32> to vector<8x128xf32>
      %c0_94 = arith.constant 0 : index
      %c0_95 = arith.constant 0 : index
      %c0_96 = arith.constant 0 : index
      %211 = vector.load %arg19[%c0_94, %c0_95, %c0_96] : memref<1x8x128xf32, #tpu.memory_space<vmem>>, vector<1x8x128xf32>
      %212 = vector.shape_cast %211 : vector<1x8x128xf32> to vector<8x128xf32>
      %213 = vector.shape_cast %210 : vector<8x128xf32> to vector<1x8x128xf32>
      tpu.vector_store %arg19[%c0_94, %c0_95, %c0_96], %213 {strides = array<i32>} : memref<1x8x128xf32, #tpu.memory_space<vmem>>, vector<1x8x128xf32>,
    } else {
    }
    return
  }
  func.func @transform_0(%arg0: i32, %arg1: i32) -> (i32, i32, i32) {
    %c0_i32 = arith.constant 0 : i32
    %c0_i32_0 = arith.constant 0 : i32
    %c0_i32_1 = arith.constant 0 : i32
    return %arg0, %c0_i32, %c0_i32_0 : i32, i32, i32
  }
  func.func @transform_1(%arg0: i32, %arg1: i32) -> (i32, i32) {
    %c0_i32 = arith.constant 0 : i32
    %c0_i32_0 = arith.constant 0 : i32
    %c0_i32_1 = arith.constant 0 : i32
    return %c0_i32, %c0_i32_0 : i32, i32
  }
  func.func @transform_2(%arg0: i32, %arg1: i32) -> (i32, i32) {
    %c0_i32 = arith.constant 0 : i32
    %c0_i32_0 = arith.constant 0 : i32
    %c0_i32_1 = arith.constant 0 : i32
    return %c0_i32, %c0_i32_0 : i32, i32
  }
  func.func @transform_3(%arg0: i32, %arg1: i32) -> (i32, i32, i32) {
    %c0_i32 = arith.constant 0 : i32
    %c0_i32_0 = arith.constant 0 : i32
    %c0_i32_1 = arith.constant 0 : i32
    return %arg1, %c0_i32, %c0_i32_0 : i32, i32, i32
  }
  func.func @transform_4(%arg0: i32, %arg1: i32) -> (i32, i32, i32) {
    %c0_i32 = arith.constant 0 : i32
    %c0_i32_0 = arith.constant 0 : i32
    %c0_i32_1 = arith.constant 0 : i32
    return %arg1, %c0_i32, %c0_i32_0 : i32, i32, i32
  }
  func.func @transform_5(%arg0: i32, %arg1: i32) -> (i32, i32, i32) {
    %c0_i32 = arith.constant 0 : i32
    %c0_i32_0 = arith.constant 0 : i32
    %c0_i32_1 = arith.constant 0 : i32
    return %arg1, %c0_i32, %c0_i32_0 : i32, i32, i32
  }
  func.func @transform_6(%arg0: i32, %arg1: i32) -> (i32, i32, i32) {
    %c0_i32 = arith.constant 0 : i32
    %c0_i32_0 = arith.constant 0 : i32
    %c0_i32_1 = arith.constant 0 : i32
    return %arg1, %c0_i32, %c0_i32_0 : i32, i32, i32
  }
  func.func @transform_7(%arg0: i32, %arg1: i32) -> (i32, i32, i32) {
    %c0_i32 = arith.constant 0 : i32
    %c0_i32_0 = arith.constant 0 : i32
    %c0_i32_1 = arith.constant 0 : i32
    return %arg1, %c0_i32, %c0_i32_0 : i32, i32, i32
  }
  func.func @transform_8(%arg0: i32, %arg1: i32) -> (i32, i32, i32) {
    %c0_i32 = arith.constant 0 : i32
    %c0_i32_0 = arith.constant 0 : i32
    %c0_i32_1 = arith.constant 0 : i32
    return %arg1, %c0_i32, %c0_i32_0 : i32, i32, i32
  }
  func.func @transform_9(%arg0: i32, %arg1: i32) -> (i32, i32, i32) {
    %c0_i32 = arith.constant 0 : i32
    %c0_i32_0 = arith.constant 0 : i32
    %c0_i32_1 = arith.constant 0 : i32
    return %arg1, %c0_i32, %c0_i32_0 : i32, i32, i32
  }
  func.func @transform_10(%arg0: i32, %arg1: i32) -> (i32, i32, i32) {
    %c0_i32 = arith.constant 0 : i32
    %c0_i32_0 = arith.constant 0 : i32
    %c0_i32_1 = arith.constant 0 : i32
    return %arg1, %c0_i32, %c0_i32_0 : i32, i32, i32
  }
  func.func @transform_11(%arg0: i32, %arg1: i32) -> (i32, i32, i32) {
    %c0_i32 = arith.constant 0 : i32
    %c0_i32_0 = arith.constant 0 : i32
    %c0_i32_1 = arith.constant 0 : i32
    return %arg1, %c0_i32, %c0_i32_0 : i32, i32, i32
  }
  func.func @transform_12(%arg0: i32, %arg1: i32) -> (i32, i32, i32) {
    %c0_i32 = arith.constant 0 : i32
    %c0_i32_0 = arith.constant 0 : i32
    %c0_i32_1 = arith.constant 0 : i32
    return %arg1, %c0_i32, %c0_i32_0 : i32, i32, i32
  }
  func.func @transform_13(%arg0: i32, %arg1: i32) -> (i32, i32, i32) {
    %c0_i32 = arith.constant 0 : i32
    %c0_i32_0 = arith.constant 0 : i32
    %c0_i32_1 = arith.constant 0 : i32
    return %arg1, %c0_i32, %c0_i32_0 : i32, i32, i32
  }
  func.func @transform_14(%arg0: i32, %arg1: i32) -> (i32, i32, i32) {
    %c0_i32 = arith.constant 0 : i32
    %c0_i32_0 = arith.constant 0 : i32
    %c0_i32_1 = arith.constant 0 : i32
    return %arg1, %c0_i32, %c0_i32_0 : i32, i32, i32
  }
  func.func @transform_15(%arg0: i32, %arg1: i32) -> (i32, i32) {
    %c0_i32 = arith.constant 0 : i32
    %c0_i32_0 = arith.constant 0 : i32
    %c0_i32_1 = arith.constant 0 : i32
    return %c0_i32, %c0_i32_0 : i32, i32
  }
  func.func @transform_16(%arg0: i32, %arg1: i32) -> (i32, i32) {
    %c0_i32 = arith.constant 0 : i32
    %c0_i32_0 = arith.constant 0 : i32
    %c0_i32_1 = arith.constant 0 : i32
    return %c0_i32, %c0_i32_0 : i32, i32
  }
  func.func @transform_17(%arg0: i32, %arg1: i32) -> (i32, i32, i32) {
    %c0_i32 = arith.constant 0 : i32
    %c0_i32_0 = arith.constant 0 : i32
    %c0_i32_1 = arith.constant 0 : i32
    return %arg0, %c0_i32, %c0_i32_0 : i32, i32, i32
  }
}

</mosaic_0001>

<bundles_post_ra>
// kernel: erc_forward.1
= control target key start
LH: loop header
LB: loop body
LE: loop exit
PB: predicated region body
PF: predicated region fallthrough
CT: control target
= control target key end

     0   :  { %s4535_s0 = inlined_call_operand.vmem [shape: f32[2,8,128], index: 0, kind: input, shape index: {}]   ;;  %s4536_s1 = inlined_call_operand.vmem [shape: f32[1,128], index: 1, kind: input, shape index: {}]   ;;  %s4537_s2 = inlined_call_operand.vmem [shape: f32[1,128], index: 2, kind: input, shape index: {}]   ;;  %s4538_s3 = inlined_call_operand.hbm [shape: bf16[2,128,384], index: 3, kind: input, shape index: {}]   ;;  %s4539_s4 = inlined_call_operand.vmem [shape: f32[2,1,384], index: 4, kind: input, shape index: {}]   ;;  %s4540_s5 = inlined_call_operand.vmem [shape: bf16[2,128,128], index: 5, kind: input, shape index: {}]   ;;  %s4541_s6 = inlined_call_operand.vmem [shape: f32[2,1,128], index: 6, kind: input, shape index: {}]   ;;  %s4542_s7 = inlined_call_operand.vmem [shape: f32[2,1,128], index: 7, kind: input, shape index: {}]   ;;  %s4543_s8 = inlined_call_operand.vmem [shape: f32[2,1,128], index: 8, kind: input, shape index: {}]   ;;  %s4544_s9 = inlined_call_operand.hbm [shape: bf16[2,128,512], index: 9, kind: input, shape index: {}]   ;;  %s4545_s10 = inlined_call_operand.vmem [shape: f32[2,1,512], index: 10, kind: input, shape index: {}]   ;;  %s4546_s11 = inlined_call_operand.hbm [shape: bf16[2,512,128], index: 11, kind: input, shape index: {}]   ;;  %s4547_s12 = inlined_call_operand.vmem [shape: f32[2,1,128], index: 12, kind: input, shape index: {}]   ;;  %s4548_s13 = inlined_call_operand.vmem [shape: f32[2,1,128], index: 13, kind: input, shape index: {}]   ;;  %s4549_s14 = inlined_call_operand.vmem [shape: f32[2,1,128], index: 14, kind: input, shape index: {}]   ;;  %s4550_s15 = inlined_call_operand.vmem [shape: bf16[128,128], index: 15, kind: input, shape index: {}]   ;;  %s4551_s16 = inlined_call_operand.vmem [shape: f32[1,128], index: 16, kind: input, shape index: {}]   ;;  %s4552_s17 = inlined_call_operand.vmem [shape: f32[2,8,128], index: 17, kind: output, shape index: {}]  }
   0x1   :  { %4564 = sst [smem:[#allocation18_spill]] %s4535_s0 }
   0x2   :  { %4565 = sst [smem:[#allocation19_spill]] %s4536_s1 }
   0x3   :  { %4566 = sst [smem:[#allocation20_spill]] %s4537_s2 }
   0x4   :  { %4567 = sst [smem:[#allocation21_spill]] %s4538_s3 }
   0x5   :  { %4568 = sst [smem:[#allocation22_spill]] %s4539_s4 }
   0x6   :  { %4569 = sst [smem:[#allocation23_spill]] %s4540_s5 }
   0x7   :  { %4570 = sst [smem:[#allocation24_spill]] %s4542_s7 }
   0x8   :  { %4571 = sst [smem:[#allocation25_spill]] %s4543_s8 }
   0x9   :  { %4572 = sst [smem:[#allocation26_spill]] %s4544_s9 }
   0xa   :  { %4573 = sst [smem:[#allocation27_spill]] %s4545_s10 }
   0xb   :  { %4574 = sst [smem:[#allocation28_spill]] %s4546_s11 }
   0xc   :  { %4575 = sst [smem:[#allocation29_spill]] %s4548_s13 }
   0xd   :  { %4576 = sst [smem:[#allocation30_spill]] %s4549_s14 }
   0xe   :  { %4577 = sst [smem:[#allocation31_spill]] %s4550_s15 }
   0xf   :  { %4578 = sst [smem:[#allocation32_spill]] %s4551_s16 }
  0x10   :  { %4579 = sst [smem:[#allocation33_spill]] %s4552_s17 }
  0x11   :  { %22 = vsyncpa [#allocation4], 0 }
  0x12   :  { %24 = vsyncpa [#allocation4 + $0x1], 0 }
  0x13   :  { %25 = vsyncpa [#allocation6], 0 }
  0x14   :  { %27 = vsyncpa [#allocation6 + $0x1], 0  ;;  %s3919_s24 = smov 0   ;;  %s3921_s25 = smov 0  }
  0x15   :  { %s3923_s26 = smov 0   ;;  %s3925_s27 = smov 0  }
  0x16   :  { %s3927_s28 = smov 0   ;;  %s3929_s29 = smov 0  }
  0x17   :  { %s3931_s0 = smov 0   ;;  %s3933_s30 = smov 0  }
  0x18 LB: > { %4580 = sst [smem:[#allocation10_spill]] %s3786_s25  ;;  %s4555_s18 = sadd.s32 4294967295, %s3810_s30   ;;  %s3810_s30 = sphi %s3933_s30, %s33_s30   ;;  %s3806_s0 = sphi %s3931_s0, %s4627_s0   ;;  %s3802_s29 = sphi %s3929_s29, %s4626_s29   ;;  %s3798_s28 = sphi %s3927_s28, %s4625_s28   ;;  %s3794_s27 = sphi %s3925_s27, %s4624_s27   ;;  %s3790_s26 = sphi %s3923_s26, %s4623_s26   ;;  %s3786_s25 = sphi %s3921_s25, %s4622_s25   ;;  %s3782_s24 = sphi %s3919_s24, %s4621_s24  }
  0x19   : > { %4581 = sst [smem:[#allocation11_spill]] %s3790_s26  ;;  %s42_s19 = sadd.s32 1, %s3802_s29 }
  0x1a   : > { %4582 = sst [smem:[#allocation12_spill]] %s3802_s29  ;;  %p43_p0 = scmp.ge.s32.totalorder %s42_s19, 2 }
  0x1b   : > { %4583 = sst [smem:[#allocation13_spill]] %s3806_s0  ;;  %s45_s1 = sadd.s32 1, %s3806_s0 }
  0x1c   : > { %4584 = sst [smem:[#allocation14_spill]] %s3810_s30  ;;  %s120_s20 = sadd.s32 1, %s3790_s26 }
  0x1d   : > { %p127_p1 = scmp.ne.s32.totalorder %s3790_s26, %s3786_s25  ;;  %s4629_s19 = smov (%p43_p0, %s42_s19), 0 }
  0x1e   : > { %4585 = sst [smem:[#allocation15_spill]] %s4629_s19  ;;  %s4631_s1 = smov (!%p43_p0, %s45_s1), %s3806_s0 }
  0x1f   : > { %s117_s21 = ssub.s32 %s3802_s29, %s4629_s19  ;;  %p128_p2 = scmp.eq.s32.totalorder %s3810_s30, 0 }
  0x20   : > { %p47_p3 = scmp.ge.s32.totalorder %s4631_s1, 2  ;;  %p118_p4 = scmp.eq.s32.totalorder %s117_s21, 0 }
  0x21   : > { %p129_p5 = por %p128_p2, %p127_p1  ;;  %p133_p6 = scmp.ne.s32.totalorder %s3786_s25, %s3782_s24 }
  0x22   : > { %s4633_s1 = smov (%p47_p3, %s4631_s1), 0  ;;  %p134_p7 = scmp.eq.s32.totalorder %s4555_s18, 0 }
  0x23   : > { %4586 = sst [smem:[#allocation16_spill]] %s4633_s1  ;;  %p3405_p8 = scmp.lt.s32.totalorder %s3810_s30, 4 }
  0x24   : > { %s3973_s22 = scalar_select %p118_p4, %s3790_s26, %s120_s20  }
  0x25   : > { %s3979_s23 = sand.u32 1, %s3790_s26   ;;  %p3981_p9 = por %p134_p7, %p133_p6 }
  0x26   : > { %4587 = sst [smem:[#allocation17_spill]] %s3973_s22  ;;  %s584_s19 = sand.u32 1, %s3810_s30  }
  0x27   : > { %s4588_s0 = scalar_select %p3981_p9, 1, 0 }
  0x28   : > { %p3986_p10 = pnand %p3405_p8, %p129_p5  ;;  %s4558_s24 = sshll.u32 %s3979_s23, 8 }
  0x29   : > { %s4559_s20 = sshll.u32 %s3802_s29, 12  ;;  %s4590_s9 = sld [smem:[#allocation26_spill]] }
  0x2a   : > { %s588_s26 = scalar_lea.vmem [#allocation5], %s4558_s24  ;;  %s4003_s15 = scalar_lea.sflag [#allocation6], %s584_s19 }
  0x2b   : > { %s595_s16 = sshll.u32 %s588_s26, 4  ;;  %p4009_p12 = pneg %p3986_p10  ;;  %s4001_s16 = int_to_ptr.vmem [resolvable:$true] %s595_s16 }
  0x2f   : > { %s3997_s22 = scalar_lea.hbm %s4590_s9, %s4559_s20  ;;  %s3655_s24 = scalar_lea.hbm %s4590_s9, 8192 }
  0x30   : > { %s3650_s2 = scalar_lea.hbm %s3997_s22, 4096  ;;  %p3656_p1 = scmp.lt.u32.totalorder %s3997_s22, %s4590_s9 }
  0x31   : > { %p3651_p11 = scmp.ne.s32.totalorder %s3997_s22, %s3650_s2  ;;  %p3657_p2 = scmp.lt.u32.totalorder %s3655_s24, %s3650_s2 }
  0x32   : > { %p3659_p4 = scmp.lt.u32.totalorder %s3650_s2, %s3997_s22 }
  0x33   : > { %p3653_p13 = pnand %p4009_p12, %p3651_p11  ;;  %p3658_p3 = por %p3657_p2, %p3656_p1 }
  0x35   : > { %p3654_p0 = pneg %p3653_p13  ;;  %p3660_p5 = por %p3659_p4, %p3658_p3 }
  0x37   : > { %p3661_p6 = pnand %p3660_p5, %p3654_p0 }
  0x39   : > { %3664 = shalt.err (!%p3661_p6)
}
  0x3a   : > { %s3665_s19 = scalar_lea.vmem %s4001_s16, 4096  ;;  %s3812_s18 = smov [#allocation5]  }
  0x3b   : > { %p3666_p7 = scmp.ne.s32.totalorder %s4001_s16, %s3665_s19  ;;  %s3670_s1 = sshll.u32 %s3812_s18, 4  ;;  %s3671_s1 = int_to_ptr.vmem [resolvable:$false] %s3670_s1 }
  0x3c   : > { %s3672_s20 = scalar_lea.vmem %s3671_s1, 8192  ;;  %p3673_p13 = scmp.lt.s32.totalorder %s4001_s16, %s3671_s1 }
  0x3d   : > { %p3668_p8 = pnand %p3666_p7, %p4009_p12  ;;  %p3674_p9 = scmp.lt.s32.totalorder %s3672_s20, %s3665_s19 }
  0x3f   : > { %p3669_p11 = pneg %p3668_p8  ;;  %p3675_p1 = por %p3674_p9, %p3673_p13 }
  0x41   : > { %p3676_p2 = pnand %p3675_p1, %p3669_p11 }
  0x43   : > { %3679 = shalt.err (!%p3676_p2)
}
  0x44   : > { %s3813_s2 = smov 256   ;;  %s3814_s24 = smov 16  }
  0x45   : > { %3401 = dma.hbm_to_vmem [thread:$0]  (!%p3986_p10), %s3997_s22, 4096, %s4001_s16, %s4003_s15, %s3813_s2, %s3813_s2, %s3814_s24  }
  0x46   : > { %s4592_s26 = sshll.u32 %s3802_s29, 12  ;;  %s4593_s11 = sld [smem:[#allocation28_spill]] }
  0x47   : > { %s4594_s20 = sshll.u32 %s3979_s23, 8  ;;  %p3059_p9 = scmp.ge.s32.totalorder %s3810_s30, 1 }
  0x48   : > { %s616_s9 = scalar_lea.vmem [#allocation7], %s4594_s20  ;;  %p649_p0 = scmp.lt.s32.totalorder %s3810_s30, 5 }
  0x49   : > { %s623_s14 = sshll.u32 %s616_s9, 4  ;;  %s3385_s10 = smul.u32 192, %s3979_s23  ;;  %s4042_s14 = int_to_ptr.vmem [resolvable:$true] %s623_s14 }
  0x4a   : > { %p4046_p3 = pnand %p3059_p9, %p649_p0  ;;  %s3386_s16 = smul.u32 3072, %s3802_s29 }
  0x4b   : > { %s4596_s3 = sld [smem:[#allocation21_spill]]  ;;  %s534_s9 = scalar_lea.vmem [#allocation3], %s3385_s10 }
  0x4c   : > { %s4038_s1 = scalar_lea.hbm %s4593_s11, %s4592_s26  ;;  %s541_s26 = sshll.u32 %s534_s9, 4  ;;  %s4057_s26 = int_to_ptr.vmem [resolvable:$true] %s541_s26 }
  0x4d   : > { %s4595_s13 = scalar_select %p4046_p3, 1, 0 }
  0x4e   : > { %s531_s19 = scalar_lea.sflag [#allocation4], %s3979_s23 }
  0x51   : > { %s4055_s24 = scalar_lea.hbm %s4596_s3, %s3386_s16  ;;  %s3685_s22 = scalar_lea.hbm %s4596_s3, 6144 }
  0x52   : > { %s3680_s18 = scalar_lea.hbm %s4055_s24, 3072  ;;  %p3686_p7 = scmp.lt.u32.totalorder %s4055_s24, %s4596_s3 }
  0x53   : > { %p3681_p4 = scmp.ne.s32.totalorder %s4055_s24, %s3680_s18  ;;  %p3687_p8 = scmp.lt.u32.totalorder %s3685_s22, %s3680_s18 }
  0x54   : > { %p3689_p13 = scmp.lt.u32.totalorder %s3680_s18, %s4055_s24 }
  0x55   : > { %p3683_p5 = pnand %p3681_p4, %p4009_p12  ;;  %p3688_p11 = por %p3687_p8, %p3686_p7 }
  0x57   : > { %p3684_p6 = pneg %p3683_p5  ;;  %p3690_p1 = por %p3689_p13, %p3688_p11 }
  0x59   : > { %p3691_p2 = pnand %p3690_p1, %p3684_p6 }
  0x5b   : > { %3694 = shalt.err (!%p3691_p2)
}
  0x5c   : > { %s3695_s10 = scalar_lea.vmem %s4057_s26, 3072  ;;  %s3815_s29 = smov [#allocation3]  }
  0x5d   : > { %p3696_p9 = scmp.ne.s32.totalorder %s4057_s26, %s3695_s10  ;;  %s3700_s9 = sshll.u32 %s3815_s29, 4  ;;  %s3701_s9 = int_to_ptr.vmem [resolvable:$false] %s3700_s9 }
  0x5e   : > { %s3702_s20 = scalar_lea.vmem %s3701_s9, 6144  ;;  %p3703_p5 = scmp.lt.s32.totalorder %s4057_s26, %s3701_s9 }
  0x5f   : > { %p3698_p0 = pnand %p3696_p9, %p4009_p12  ;;  %p3704_p3 = scmp.lt.s32.totalorder %s3702_s20, %s3695_s10 }
  0x61   : > { %p3699_p4 = pneg %p3698_p0  ;;  %p3705_p7 = por %p3704_p3, %p3703_p5 }
  0x63   : > { %p3706_p8 = pnand %p3705_p7, %p3699_p4 }
  0x65   : > { %3709 = shalt.err (!%p3706_p8)
}
  0x66   : > { %s3816_s18 = smov 192   ;;  %s3817_s22 = smov 12  }
  0x67   : > { %3398 = dma.hbm_to_vmem [thread:$0]  (!%p3986_p10), %s4055_s24, 3072, %s4057_s26, %s531_s19, %s3816_s18, %s3816_s18, %s3817_s22  }
  0x68   : > { %s3710_s16 = scalar_lea.hbm %s4038_s1, 4096  ;;  %s3715_s29 = scalar_lea.hbm %s4593_s11, 8192 }
  0x69   : > { %p3711_p6 = scmp.ne.s32.totalorder %s4038_s1, %s3710_s16  ;;  %p3716_p13 = scmp.lt.u32.totalorder %s4038_s1, %s4593_s11 }
  0x6a   : > { %p3717_p1 = scmp.lt.u32.totalorder %s3715_s29, %s3710_s16  ;;  %p3719_p9 = scmp.lt.u32.totalorder %s3710_s16, %s4038_s1 }
  0x6b   : > { %p3713_p3 = pnand %p3711_p6, %p4009_p12 }
  0x6c   : > { %p3718_p2 = por %p3717_p1, %p3716_p13 }
  0x6d   : > { %p3714_p11 = pneg %p3713_p3 }
  0x6e   : > { %p3720_p0 = por %p3719_p9, %p3718_p2 }
  0x70   : > { %p3721_p4 = pnand %p3720_p0, %p3714_p11 }
  0x72   : > { %3724 = shalt.err (!%p3721_p4)
}
  0x73   : > { %s3725_s23 = scalar_lea.vmem %s4042_s14, 4096  ;;  %s3818_s24 = smov [#allocation7]  }
  0x74   : > { %p3726_p5 = scmp.ne.s32.totalorder %s4042_s14, %s3725_s23  ;;  %s3730_s26 = sshll.u32 %s3818_s24, 4  ;;  %s3731_s26 = int_to_ptr.vmem [resolvable:$false] %s3730_s26 }
  0x75   : > { %s3732_s19 = scalar_lea.vmem %s3731_s26, 8192  ;;  %p3733_p6 = scmp.lt.s32.totalorder %s4042_s14, %s3731_s26 }
  0x76   : > { %p3728_p7 = pnand %p3726_p5, %p4009_p12  ;;  %p3734_p3 = scmp.lt.s32.totalorder %s3732_s19, %s3725_s23 }
  0x78   : > { %p3729_p8 = pneg %p3728_p7  ;;  %p3735_p13 = por %p3734_p3, %p3733_p6 }
  0x7a   : > { %p3736_p1 = pnand %p3735_p13, %p3729_p8 }
  0x7c   : > { %3739 = shalt.err (!%p3736_p1)
}
  0x7d   : > { %s3819_s18 = smov 64   ;;  %s3820_s22 = smov 4  }
  0x7e   : > { %3404 = dma.hbm_to_vmem [thread:$0]  (!%p3986_p10), %s4038_s1, 4096, %s4042_s14, %s4003_s15, %s3819_s18, %s3819_s18, %s3820_s22  }
  0x7f   : > { %p4597_p12 = scmp.ne.s32.totalorder %s4595_s13, 0 }
  0x80   : > { %s4108_s17 = sand.u32 (!%p4597_p12), 1, %s3786_s25   ;;  %p4598_p11 = scmp.ne.s32.totalorder (!%p4597_p12), %s4588_s0, 0 }
  0x81   : > { %653 = sbr.rel (%p4597_p12) target bundleno = 4723 (0x1273), region = 88  ;;  %s656_s2 = scalar_lea.sflag (!%p4597_p12), [#allocation4], %s4108_s17 }
  0x82   : > { %s3387_s16 = smul.u32 (!%p4597_p12), 192, %s4108_s17 }
  0x84   : > { %s4112_s10 = scalar_lea.vmem (!%p4597_p12), [#allocation3], %s3387_s16 }
  0x88   : > { %3773 = dma.done.wait (%p4598_p11), %s656_s2, 3072  }
  0x89   : > { %3775 = vsyncadd (%p4598_p11), %s656_s2, 4294964224  ;;  %s4599_s14 = sadd.s32 4294967295, %s3810_s30   ;;  %s3060_s15 = sshll.u32 %s4108_s17, 8 }
  0x8a   : > { %s664_s13 = sand.u32 1, %s4599_s14   ;;  %s4121_s1 = scalar_lea.vmem [#allocation5], %s3060_s15 }
  0x8b   : > { %s665_s21 = scalar_lea.sflag [#allocation6], %s664_s13 }
  0x8c   : > { %3777 = dma.done.wait (%p4598_p11), %s665_s21, 8192  }
  0x8d   : > { %3779 = vsyncadd (%p4598_p11), %s665_s21, 4294959104  ;;  %p772_p10 = scmp.lt.s32.totalorder %s3798_s28, 1  ;;  %p776_p2 = scmp.lt.s32.totalorder %s3794_s27, 1 }
  0x8e   : > { %s4600_s23 = sld [smem:[#allocation18_spill]]  ;;  %s4601_s4 = sld [smem:[#allocation22_spill]] }
  0x8f   : > { %s4635_s28 = smov (!%p772_p10, %s3798_s28), 1  ;;  %s4602_s5 = sld [smem:[#allocation23_spill]] }
  0x90   : > { %s4131_s29 = scalar_select %p776_p2, %s3794_s27, 1 }
  0x91   : > { %s3062_s0 = sshll.u32 %s4635_s28, 3  ;;  %s4606_s21 = sld [smem:[#allocation29_spill]] }
  0x92   : > { %s3388_s26 = smul.u32 3, %s4131_s29  ;;  %s3197_s19 = sshll.u32 %s4131_s29, 6 }
  0x93   : > { %s3065_s18 = sshll.u32 %s4131_s29, 2  ;;  %s800_s16 = scalar_lea.vmem %s4547_s12, %s4131_s29 }
  0x94   : > { %s775_s24 = scalar_lea.vmem %s4600_s23, %s3062_s0  ;;  %s4145_s14 = scalar_lea.vmem %s4601_s4, %s3388_s26 }
  0x95   : > { %s4150_s3 = scalar_lea.vmem %s4602_s5, %s3197_s19  ;;  %s4605_s4 = sld [smem:[#allocation27_spill]] }
  0x96   : > { %s4607_s9 = sld [smem:[#allocation30_spill]]  ;;  %s4608_s25 = sld [smem:[#allocation33_spill]] }
  0x97   : > { %s803_s5 = scalar_lea.vmem %s4606_s21, %s4131_s29  ;;  %s4183_s17 = scalar_lea.vmem [#allocation7], %s3060_s15 }
  0x98   : > { %p3067_p9 = scmp.ne.s32.totalorder %s3794_s27, 0 }
  0x99   : > { %v816_v0 = vld [vmem:[%s775_s24] sm:$0xff] (!%p3067_p9) }
  0x9a   : > { %815 = sbr.rel (%p3067_p9) target bundleno = 466 (0x1d2), region = 104  ;;  %819 = vadd.xlane.f32.xlu0 (!%p3067_p9), %v816_v0 }
  0x9b   : > { %s4168_s30 = scalar_lea.vmem %s4605_s4, %s3065_s18  ;;  %s4610_s18 = sld [smem:[#allocation20_spill]] (!%p3067_p9) }
  0x9c   : > { %s806_s7 = scalar_lea.vmem %s4607_s9, %s4131_s29  ;;  %s4181_s8 = scalar_lea.vmem %s4608_s25, %s3062_s0 }
  0x9d   : > { %s4609_s0 = sld [smem:[#allocation19_spill]] (!%p3067_p9) }
  0xa1   : > { %v3069_v11 = vld [vmem:[%s4610_s18] ss:$0 sm:$0xff] }
  0xa3   : > { %v3068_v9 = vld [vmem:[%s4609_s0] ss:$0 sm:$0xff] }
 0x127   : > { %v820_v1 = vpop.xlane.xlu0 %819 }
 0x128   : > { %v822_v2 = vmul.f32 0.0078125, %v820_v1 }
 0x12a   : > { %v823_v3 = vsub.f32 %v816_v0, %v822_v2 }
 0x12c   : > { %v824_v4 = vmul.f32 %v823_v3, %v823_v3 }
 0x12e   : > { %825 = vadd.xlane.f32.xlu0 %v824_v4 }
 0x1bb   : > { %v826_v5 = vpop.xlane.xlu0 %825 }
 0x1bc   : > { %v827_v6 = vmul.f32 0.0078125, %v826_v5 }
 0x1be   : > { %v828_v7 = vadd.f32 1e-05, %v827_v6 }
 0x1c0   : > { %3484 = vrsqrt.f32 %v828_v7 }
 0x1ca   : > { %v3485_v8 = vpop.eup %3484 }
 0x1cb   : > { %v830_v10 = vmul.f32 %v3485_v8, %v823_v3 }
 0x1cd   : > { %v837_v12 = vmul.f32 %v3068_v9, %v830_v10 }
 0x1cf   : > { %v844_v13 = vadd.f32 %v3069_v11, %v837_v12 }
 0x1d1   : > { %845 = vst [vmem:[#allocation2] sm:$0xff] %v844_v13 }
 0x1d2 PF: > { %v3486_v14 = vld [vmem:[%s4112_s10 + $0x4] ss:$12 sps:$4 sm:$0xff]   ;;  %v3488_v15 = vld [vmem:[%s4112_s10] ss:$12 sps:$4 sm:$0xff]   ;;  %v3821_v16 = vmov 0   ;;  %v3822_v17 = vmov 0.0   ;;  %v882_v42 = vlaneseq  ;;  %s4611_s26 = scalar_lea.vmem %s4541_s6, %s4131_s29 }
 0x1d3   : > { %1057 = vmatprep.mubr.bf16.mxu0 %v3821_v16  ;;  %3285 = vmatprep.subr.bf16.mxu1 %v3822_v17  ;;  %v3489_v18 = vld [vmem:[%s4112_s10 + $0x1c] ss:$12 sps:$4 sm:$0xff]   ;;  %vm3823_vm0 = vmmov 0   ;;  %v3491_v19 = vld [vmem:[%s4112_s10 + $0x18] ss:$12 sps:$4 sm:$0xff]   ;;  %vm1106_vm1 = vcmask 261120  }
 0x1d4   : > { %1025 = vmatprep.subr.bf16.mxu0 %v3486_v14  ;;  %3301 = vmatprep.mubr.msk.bf16.mxu1 %vm3823_vm0, %v3822_v17  ;;  %v3492_v20 = vld [vmem:[%s4112_s10 + $0x34] ss:$12 sps:$4 sm:$0xff]   ;;  %v3494_v21 = vld [vmem:[%s4112_s10 + $0x30] ss:$12 sps:$4 sm:$0xff]   ;;  %v3495_v22 = vld [vmem:[%s4112_s10 + $0x4c] ss:$12 sps:$4 sm:$0xff]  }
 0x1d5   : > { %1026 = vmatpush1.bf16.msra.mxu0 %v3488_v15  ;;  %v3497_v23 = vld [vmem:[%s4112_s10 + $0x48] ss:$12 sps:$4 sm:$0xff]   ;;  %v3498_v25 = vld [vmem:[%s4112_s10 + $0x64] ss:$12 sps:$4 sm:$0xff]   ;;  %v3511_v26 = vld [vmem:[%s4112_s10 + $0x20] ss:$12 sps:$4 sm:$0xff]  }
 0x1d6   : > { %1027 = vmatprep.subr.bf16.mxu0 %v3489_v18  ;;  %v3510_v24 = vld [vmem:[%s4112_s10 + $0x8] ss:$12 sps:$4 sm:$0xff]   ;;  %v3500_v27 = vld [vmem:[%s4112_s10 + $0x60] ss:$12 sps:$4 sm:$0xff]   ;;  %v3503_v29 = vld [vmem:[%s4112_s10 + $0x78] ss:$12 sps:$4 sm:$0xff]  }
 0x1d7   : > { %3286 = vmatpush3.bf16.msra.mxu1 %v3510_v24  ;;  %v3501_v28 = vld [vmem:[%s4112_s10 + $0x7c] ss:$12 sps:$4 sm:$0xff]   ;;  %v3512_v30 = vld [vmem:[%s4112_s10 + $0x38] ss:$12 sps:$4 sm:$0xff]   ;;  %v3504_v31 = vld [vmem:[%s4112_s10 + $0x94] ss:$12 sps:$4 sm:$0xff]  }
 0x1d8   : > { %3287 = vmatprep.subr.bf16.mxu1 %v3822_v17  ;;  %v3513_v32 = vld [vmem:[%s4112_s10 + $0x50] ss:$12 sps:$4 sm:$0xff]   ;;  %v3507_v34 = vld [vmem:[%s4112_s10 + $0xac] ss:$12 sps:$4 sm:$0xff]   ;;  %v3514_v35 = vld [vmem:[%s4112_s10 + $0x68] ss:$12 sps:$4 sm:$0xff]  }
 0x1d9   : > { %1028 = vmatpush1.bf16.msra.mxu0 %v3491_v19  ;;  %v3506_v33 = vld [vmem:[%s4112_s10 + $0x90] ss:$12 sps:$4 sm:$0xff]   ;;  %v3509_v36 = vld [vmem:[%s4112_s10 + $0xa8] ss:$12 sps:$4 sm:$0xff]   ;;  %v3515_v38 = vld [vmem:[%s4112_s10 + $0x80] ss:$12 sps:$4 sm:$0xff]  }
 0x1da   : > { %1029 = vmatprep.subr.bf16.mxu0 %v3492_v20  ;;  %v4220_v37 = vld [vmem:[#allocation2] sm:$0xff]  ;;  %v4237_v43 = vshrl.u32 %v882_v42, 7  ;;  %vm1184_vm2 = vcmask 64512   ;;  %s3825_s24 = smov 64   ;;  %vm1781_vm3 = vcmask 523264   ;;  %vm1783_vm4 = vcmask 785408  }
 0x1db   : > { %3288 = vmatpush3.bf16.msra.mxu1 %v3511_v26  ;;  %v847_v39 = vpack.c.bf16 %v4220_v37, %v4220_v37  ;;  %v3516_v40 = vld [vmem:[%s4112_s10 + $0x98] ss:$12 sps:$4 sm:$0xff]   ;;  %v3517_v41 = vld [vmem:[%s4112_s10 + $0xb0] ss:$12 sps:$4 sm:$0xff]   ;;  %s3824_s10 = smov 96   ;;  %s4612_s13 = sld [smem:[#allocation24_spill]] }
 0x1dc   : > { %3289 = vmatprep.subr.bf16.mxu1 %v3822_v17  ;;  %v888_v44 = vsub.s32 1, %v4237_v43  ;;  %v880_v45 = vld [vmem:[%s4145_s14] sm:$0x7]  ;;  %v4242_v46 = vsub.s32 0, %v4237_v43  ;;  %v892_v54 = vsub.s32 2, %v4237_v43  ;;  %s3826_s14 = smov 32  }
 0x1dd   : > { %1030 = vmatpush1.bf16.msra.mxu0 %v3494_v21  ;;  %s4614_s28 = sld [smem:[#allocation25_spill]]  ;;  %p3184_p0 = scmp.ne.s32.totalorder %s3794_s27, 1 }
 0x1de   : > { %1031 = vmatprep.subr.bf16.mxu0 %v3495_v22  ;;  %v889_v47 = vrot.slane %v880_v45, %v888_v44  ;;  %v885_v49 = vrot.slane %v880_v45, %v4242_v46  ;;  %v893_v56 = vrot.slane %v880_v45, %v892_v54  ;;  %vm3828_vm9 = vmmov (!%p3184_p0), 0  }
 0x1df   : > { %3290 = vmatpush3.bf16.msra.mxu1 %v3512_v30 }
 0x1e0   : > { %3291 = vmatprep.subr.bf16.mxu1 %v3822_v17 }
 0x1e1   : > { %1032 = vmatpush1.bf16.msra.mxu0 %v3497_v23  ;;  %s4613_s21 = scalar_lea.vmem %s4612_s13, %s4131_s29 }
 0x1e2   : > { %1033 = vmatprep.subr.bf16.mxu0 %v3498_v25 }
 0x1e3   : > { %3292 = vmatpush3.bf16.msra.mxu1 %v3513_v32  ;;  %s4615_s20 = scalar_lea.vmem %s4614_s28, %s4131_s29 }
 0x1e4   : > { %3293 = vmatprep.subr.bf16.mxu1 %v3822_v17 }
 0x1e5   : > { %1034 = vmatpush1.bf16.msra.mxu0 %v3500_v27 }
 0x1e6   : > { %1035 = vmatprep.subr.bf16.mxu0 %v3501_v28 }
 0x1e7   : > { %3294 = vmatpush3.bf16.msra.mxu1 %v3514_v35 }
 0x1e8   : > { %3295 = vmatprep.subr.bf16.mxu1 %v3822_v17 }
 0x1e9   : > { %1036 = vmatpush1.bf16.msra.mxu0 %v3503_v29 }
 0x1ea   : > { %1037 = vmatprep.subr.bf16.mxu0 %v3504_v31 }
 0x1eb   : > { %3296 = vmatpush3.bf16.msra.mxu1 %v3515_v38 }
 0x1ec   : > { %3297 = vmatprep.subr.bf16.mxu1 %v3822_v17 }
 0x1ed   : > { %1038 = vmatpush1.bf16.msra.mxu0 %v3506_v33 }
 0x1ee   : > { %1039 = vmatprep.subr.bf16.mxu0 %v3507_v34 }
 0x1ef   : > { %3298 = vmatpush3.bf16.msra.mxu1 %v3516_v40 }
 0x1f0   : > { %3299 = vmatprep.subr.bf16.mxu1 %v3822_v17 }
 0x1f1   : > { %1040 = vmatpush1.bf16.msra.mxu0 %v3509_v36 }
 0x1f2   : > { %3345 = vmatprep.subr.bf16.mxu0 %v3822_v17 }
 0x1f3   : > { %3300 = vmatpush3.bf16.msra.mxu1 %v3517_v41 }
 0x1f4   : > { %1058 = vmatmul.mubr.bf16.vlgmr.msra.gmra.mrb[0].mxu0 %v847_v39  ;;  %3305 = vmatprep.subr.mxu1 %v3822_v17 }
 0x1f5   : > { %3361 = vmatprep.mubr.msk.bf16.mxu0 %vm3823_vm0, %v3822_v17 }
 0x1f6   : > { %3302 = vmatmul.mubr.bf16.vlgmr.msra.gmra.mrb[0].mxu1 %v847_v39 }
 0x1f7   : > { %3307 = vmatprep.mubr.msk.f32.mxu1 %vm3823_vm0, %v3822_v17 }
 0x2c7   : > { %v1059_v48 = vpop.f32.mrb[0].mxu0 }
 0x2c8   : > { %v1061_v50 = vpop.f32.mrb[1].mxu0  ;;  %v4254_v55 = vadd.f32 %v1059_v48, %v885_v49 }
 0x2c9   : > { %v4247_v51 = vadd.f32 %v1061_v50, %v889_v47  ;;  %v1063_v52 = vpop.f32.mrb[2].mxu0  ;;  %v1100_v57 = vpop.f32.mrb[0].mxu1 }
 0x2ca   : > { %v1064_v53 = vpop.f32.mrb[3].mxu0  ;;  %v4265_v58 = vadd.f32 %v1100_v57, %v893_v56  ;;  %v3303_v59 = vpop.f32.mrb[1].mxu1 }
 0x2cb   : > { %1271 = vrot.lane.b32.xlu1 %v4247_v51, %s3824_s10  ;;  %3306 = vmatpush3.xpose.msk.msra.mxu1 %vm1106_vm1, %v4247_v51  ;;  %v1103_v60 = vpop.f32.mrb[2].mxu1 }
 0x2cc   : > { %3310 = vmatprep.subr.mxu1 %v3822_v17  ;;  %v3304_v61 = vpop.f32.mrb[3].mxu1 }
 0x2ce   : > { %3308 = vmatmul.mubr.msk.f32.vlgmr.msra.gmra.mrb[4].mxu1 %vm1106_vm1, %v4254_v55 }
 0x2cf   : > { %1269 = vrot.lane.b32.xlu1 %v4254_v55, %s3824_s10  ;;  %3312 = vmatprep.mubr.msk.f32.mxu1 %vm3823_vm0, %v3822_v17 }
 0x2d0   : > { %3311 = vmatpush3.msra.mxu1 %v4265_v58 }
 0x2d1   : > { %3315 = vmatprep.subr.mxu1 %v3822_v17 }
 0x33d   : > { %v1272_v9 = vpop.permute.xlu1 %1271 }
 0x341   : > { %v1270_v11 = vpop.permute.xlu1 %1269 }
 0x3a1   : > { %v1179_v62 = vpop.f32.mrb[4].mxu1 }
 0x3a2   : > { %v1183_v63 = vmul.f32 0.17677669, %v1179_v62  ;;  %v3309_v0 = vpop.f32.mrb[5].mxu1 }
 0x3a4   : > { %v1185_v1 = vsel %vm1184_vm2, %v1183_v63, -inf }
 0x3a5   : > { %1186 = vmax.xlane.f32.xlu0 %v1185_v1 }
 0x432   : > { %v1187_v2 = vpop.xlane.xlu0 %1186 }
 0x433   : > { %v1188_v3 = vsub.f32 %v1183_v63, %v1187_v2 }
 0x435   : > { %v1189_v4 = vmul.f32 1.442695, %v1188_v3 }
 0x437   : > { %3606 = vpow2.f32 %v1189_v4  ;;  %v3518_v4 = vld [vmem:[%s4150_s3] sm:$0xff]  }
 0x438   : > { %3346 = vmatpush3.bf16.msra.mxu0 %v3518_v4 }
 0x439   : > { %3347 = vmatprep.subr.bf16.mxu0 %v3822_v17 }
 0x441   : > { %v3607_v5 = vpop.eup %3606 }
 0x442   : > { %v1191_v6 = vsel %vm1184_vm2, %v3607_v5, 0.0 }
 0x443   : > { %1192 = vadd.xlane.f32.xlu0 %v1191_v6  ;;  %v3520_v6 = vld [vmem:[%s4150_s3 + $0x10] sm:$0xff]  }
 0x4d0   : > { %v1193_v7 = vpop.xlane.xlu0 %1192 }
 0x4d1   : > { %3608 = vrcp.f32 %v1193_v7  ;;  %v3521_v7 = vld [vmem:[%s4150_s3 + $0x18] sm:$0xff]  }
 0x4db   : > { %v3609_v8 = vpop.eup %3608 }
 0x4dc   : > { %v1195_v10 = vmul.f32 %v3609_v8, %v3607_v5  ;;  %v3519_v5 = vld [vmem:[%s4150_s3 + $0x8] sm:$0xff]   ;;  %v3522_v8 = vld [vmem:[%s4150_s3 + $0x20] sm:$0xff]  }
 0x4dd   : > { %3348 = vmatpush3.bf16.msra.mxu0 %v3519_v5 }
 0x4de   : > { %3313 = vmatmul.mubr.msk.f32.vlgmr.msra.gmra.mrb[6].mxu1 %vm1184_vm2, %v1195_v10  ;;  %3349 = vmatprep.subr.bf16.mxu0 %v3822_v17  ;;  %v3524_v10 = vld [vmem:[%s4150_s3 + $0x30] sm:$0xff]  }
 0x4df   : > { %3316 = vmatpush3.xpose.msk.msra.mxu1 %vm1106_vm1, %v1272_v9  ;;  %3317 = vmatprep.mubr.msk.f32.mxu1 %vm3823_vm0, %v3822_v17  ;;  %v3523_v9 = vld [vmem:[%s4150_s3 + $0x28] sm:$0xff]  }
 0x4e0   : > { %3320 = vmatprep.subr.mxu1 %v3822_v17 }
 0x4e1   : > { %3350 = vmatpush3.bf16.msra.mxu0 %v3520_v6 }
 0x4e2   : > { %3318 = vmatmul.mubr.msk.f32.vlgmr.msra.gmra.mrb[8].mxu1 %vm1106_vm1, %v1270_v11  ;;  %3351 = vmatprep.subr.bf16.mxu0 %v3822_v17  ;;  %v3525_v11 = vld [vmem:[%s4150_s3 + $0x38] sm:$0xff]  }
 0x4e3   : > { %3322 = vmatprep.mubr.msk.f32.mxu1 %vm3823_vm0, %v3822_v17 }
 0x4e5   : > { %3352 = vmatpush3.bf16.msra.mxu0 %v3521_v7 }
 0x4e6   : > { %3353 = vmatprep.subr.bf16.mxu0 %v3822_v17 }
 0x4e9   : > { %3354 = vmatpush3.bf16.msra.mxu0 %v3522_v8  ;;  %v3115_v8 = vld [vmem:[%s4613_s21] ss:$0 sm:$0xff] }
 0x4ea   : > { %3355 = vmatprep.subr.bf16.mxu0 %v3822_v17 }
 0x4ed   : > { %3356 = vmatpush3.bf16.msra.mxu0 %v3523_v9 }
 0x4ee   : > { %3357 = vmatprep.subr.bf16.mxu0 %v3822_v17 }
 0x4f1   : > { %3358 = vmatpush3.bf16.msra.mxu0 %v3524_v10  ;;  %v3116_v10 = vld [vmem:[%s4615_s20] ss:$0 sm:$0xff]  ;;  %s4619_s20 = sld [smem:[#allocation32_spill]] (!%p3184_p0) }
 0x4f2   : > { %3359 = vmatprep.subr.bf16.mxu0 %v3822_v17 }
 0x4f5   : > { %3360 = vmatpush3.bf16.msra.mxu0 %v3525_v11 }
 0x5b1   : > { %v4279_v12 = vpop.f32.mrb[6].mxu1 }
 0x5b2   : > { %v3314_v13 = vpop.f32.mrb[7].mxu1 }
 0x5b5   : > { %v1343_v14 = vpop.f32.mrb[8].mxu1 }
 0x5b6   : > { %v1347_v15 = vmul.f32 0.17677669, %v1343_v14  ;;  %v3319_v18 = vpop.f32.mrb[9].mxu1 }
 0x5b8   : > { %v1348_v19 = vsel %vm1184_vm2, %v1347_v15, -inf }
 0x5b9   : > { %1349 = vmax.xlane.f32.xlu0 %v1348_v19 }
 0x5cf   : > { %1360 = vrot.lane.b32.xlu0 %v4265_v58, %s3824_s10 }
 0x5d3   : > { %1438 = vrot.lane.b32.xlu0 %v4247_v51, %s3825_s24 }
 0x5d7   : > { %1436 = vrot.lane.b32.xlu0 %v4254_v55, %s3825_s24 }
 0x646   : > { %v1350_v20 = vpop.xlane.xlu0 %1349 }
 0x647   : > { %v1351_v21 = vsub.f32 %v1347_v15, %v1350_v20 }
 0x649   : > { %v1352_v22 = vmul.f32 1.442695, %v1351_v21 }
 0x64a   : > { %v1361_v23 = vpop.permute.xlu0 %1360 }
 0x64b   : > { %3610 = vpow2.f32 %v1352_v22  ;;  %3321 = vmatpush3.msra.mxu1 %v1361_v23  ;;  %v3106_v23 = vld [vmem:[%s4611_s26] ss:$0 sm:$0xff] }
 0x64c   : > { %3325 = vmatprep.subr.mxu1 %v3822_v17 }
 0x64e   : > { %v1439_v28 = vpop.permute.xlu0 %1438 }
 0x652   : > { %v1437_v30 = vpop.permute.xlu0 %1436 }
 0x655   : > { %v3611_v24 = vpop.eup %3610 }
 0x656   : > { %v1354_v25 = vsel %vm1184_vm2, %v3611_v24, 0.0 }
 0x657   : > { %1355 = vadd.xlane.f32.xlu1 %v1354_v25 }
 0x668   : > { %1526 = vrot.lane.b32.xlu1 %v4265_v58, %s3825_s24 }
 0x66c   : > { %1604 = vrot.lane.b32.xlu1 %v4247_v51, %s3826_s14 }
 0x6e4   : > { %v1356_v26 = vpop.xlane.xlu1 %1355 }
 0x6e5   : > { %3612 = vrcp.f32 %v1356_v26 }
 0x6e8   : > { %v1527_v31 = vpop.permute.xlu1 %1526 }
 0x6ec   : > { %v1605_v47 = vpop.permute.xlu1 %1604 }
 0x6ef   : > { %v3613_v27 = vpop.eup %3612 }
 0x6f0   : > { %v1358_v29 = vmul.f32 %v3613_v27, %v3611_v24 }
 0x6f2   : > { %3323 = vmatmul.mubr.msk.f32.vlgmr.msra.gmra.mrb[10].mxu1 %vm1184_vm2, %v1358_v29  ;;  %v3526_v29 = vld [vmem:[%s4121_s1] ss:$16 sps:$4 sm:$0xff]  }
 0x6f3   : > { %3326 = vmatpush3.xpose.msk.msra.mxu1 %vm1106_vm1, %v1439_v28  ;;  %3327 = vmatprep.mubr.msk.f32.mxu1 %vm3823_vm0, %v3822_v17 }
 0x6f4   : > { %3330 = vmatprep.subr.mxu1 %v3822_v17 }
 0x6f6   : > { %3328 = vmatmul.mubr.msk.f32.vlgmr.msra.gmra.mrb[12].mxu1 %vm1106_vm1, %v1437_v30  ;;  %v3528_v30 = vld [vmem:[%s4121_s1 + $0x4] ss:$16 sps:$4 sm:$0xff]  }
 0x6f7   : > { %3331 = vmatpush3.msra.mxu1 %v1527_v31  ;;  %3332 = vmatprep.mubr.msk.f32.mxu1 %vm3823_vm0, %v3822_v17  ;;  %v3531_v31 = vld [vmem:[%s4121_s1 + $0xc] ss:$16 sps:$4 sm:$0xff]  }
 0x6f8   : > { %3335 = vmatprep.subr.mxu1 %v3822_v17  ;;  %2182 = vmatprep.subr.bf16.mxu0 %v3531_v31  ;;  %v3591_v31 = vld [vmem:[%s4183_s17 + $0xe0] sm:$0xff]  }
 0x7c5   : > { %v1432_v32 = vpop.f32.mrb[10].mxu1 }
 0x7c6   : > { %v3324_v33 = vpop.f32.mrb[11].mxu1 }
 0x7c7   : > { %v3537_v33 = vld [vmem:[%s4121_s1 + $0x2c] ss:$16 sps:$4 sm:$0xff]  }
 0x7c9   : > { %v1510_v34 = vpop.f32.mrb[12].mxu1 }
 0x7ca   : > { %v1514_v35 = vmul.f32 0.17677669, %v1510_v34  ;;  %v3329_v36 = vpop.f32.mrb[13].mxu1  ;;  %v3532_v34 = vld [vmem:[%s4121_s1 + $0x20] ss:$16 sps:$4 sm:$0xff]  }
 0x7cb   : > { %v3540_v36 = vld [vmem:[%s4121_s1 + $0x44] ss:$16 sps:$4 sm:$0xff]  }
 0x7cc   : > { %v1515_v38 = vsel %vm1184_vm2, %v1514_v35, -inf }
 0x7cd   : > { %1516 = vmax.xlane.f32.xlu0 %v1515_v38  ;;  %v3538_v38 = vld [vmem:[%s4121_s1 + $0x40] ss:$16 sps:$4 sm:$0xff]  }
 0x85a   : > { %v1517_v39 = vpop.xlane.xlu0 %1516 }
 0x85b   : > { %v1518_v40 = vsub.f32 %v1514_v35, %v1517_v39  ;;  %v3535_v35 = vld [vmem:[%s4121_s1 + $0x28] ss:$16 sps:$4 sm:$0xff]  }
 0x85c   : > { %v3541_v39 = vld [vmem:[%s4121_s1 + $0x48] ss:$16 sps:$4 sm:$0xff]  }
 0x85d   : > { %v1519_v41 = vmul.f32 1.442695, %v1518_v40 }
 0x85f   : > { %3614 = vpow2.f32 %v1519_v41 }
 0x869   : > { %v3615_v42 = vpop.eup %3614 }
 0x86a   : > { %v1521_v45 = vsel %vm1184_vm2, %v3615_v42, 0.0 }
 0x86b   : > { %1522 = vadd.xlane.f32.xlu1 %v1521_v45 }
 0x87c   : > { %1602 = vrot.lane.b32.xlu1 %v4254_v55, %s3826_s14 }
 0x8f8   : > { %v1523_v48 = vpop.xlane.xlu1 %1522 }
 0x8f9   : > { %3616 = vrcp.f32 %v1523_v48  ;;  %v3549_v48 = vld [vmem:[%s4121_s1 + $0x6c] ss:$16 sps:$4 sm:$0xff]  }
 0x8fc   : > { %v1603_v51 = vpop.permute.xlu1 %1602 }
 0x903   : > { %v3617_v49 = vpop.eup %3616 }
 0x904   : > { %v1525_v50 = vmul.f32 %v3617_v49, %v3615_v42  ;;  %v3544_v49 = vld [vmem:[%s4121_s1 + $0x60] ss:$16 sps:$4 sm:$0xff]  }
 0x906   : > { %3333 = vmatmul.mubr.msk.f32.vlgmr.msra.gmra.mrb[14].mxu1 %vm1184_vm2, %v1525_v50  ;;  %v3547_v50 = vld [vmem:[%s4121_s1 + $0x68] ss:$16 sps:$4 sm:$0xff]  }
 0x907   : > { %3336 = vmatpush3.xpose.msk.msra.mxu1 %vm1106_vm1, %v1605_v47  ;;  %3337 = vmatprep.mubr.msk.f32.mxu1 %vm3823_vm0, %v3822_v17  ;;  %v3546_v47 = vld [vmem:[%s4121_s1 + $0x64] ss:$16 sps:$4 sm:$0xff]  }
 0x908   : > { %3340 = vmatprep.subr.mxu1 %v3822_v17 }
 0x90a   : > { %3338 = vmatmul.mubr.msk.f32.vlgmr.msra.gmra.mrb[16].mxu1 %vm1106_vm1, %v1603_v51  ;;  %v3552_v51 = vld [vmem:[%s4121_s1 + $0x84] ss:$16 sps:$4 sm:$0xff]  }
 0x90b   : > { %3342 = vmatprep.mubr.msk.f32.mxu1 %vm3823_vm0, %v3822_v17 }
 0x9d9   : > { %v1598_v52 = vpop.f32.mrb[14].mxu1 }
 0x9da   : > { %v3334_v53 = vpop.f32.mrb[15].mxu1 }
 0x9db   : > { %v3550_v53 = vld [vmem:[%s4121_s1 + $0x80] ss:$16 sps:$4 sm:$0xff]  }
 0x9dd   : > { %v1676_v55 = vpop.f32.mrb[16].mxu1 }
 0x9de   : > { %v1680_v56 = vmul.f32 0.17677669, %v1676_v55  ;;  %v3339_v57 = vpop.f32.mrb[17].mxu1  ;;  %v3553_v55 = vld [vmem:[%s4121_s1 + $0x88] ss:$16 sps:$4 sm:$0xff]  }
 0x9df   : > { %v3561_v57 = vld [vmem:[%s4121_s1 + $0xac] ss:$16 sps:$4 sm:$0xff]  }
 0x9e0   : > { %v1681_v59 = vsel %vm1184_vm2, %v1680_v56, -inf }
 0x9e1   : > { %1682 = vmax.xlane.f32.xlu0 %v1681_v59  ;;  %v3556_v59 = vld [vmem:[%s4121_s1 + $0xa0] ss:$16 sps:$4 sm:$0xff]  }
 0x9f7   : > { %1692 = vrot.lane.b32.xlu0 %v4265_v58, %s3826_s14 }
 0x9fb   : > { %1769 = vrot.lane.b32.xlu0 %v1432_v32, %s3826_s14  ;;  %v3534_v32 = vld [vmem:[%s4121_s1 + $0x24] ss:$16 sps:$4 sm:$0xff]  }
 0x9ff   : > { %1773 = vrot.lane.b32.xlu0 %v1598_v52, %s3825_s24  ;;  %v3555_v52 = vld [vmem:[%s4121_s1 + $0x8c] ss:$16 sps:$4 sm:$0xff]  }
 0xa6e   : > { %v1683_v60 = vpop.xlane.xlu0 %1682 }
 0xa6f   : > { %v1684_v61 = vsub.f32 %v1680_v56, %v1683_v60  ;;  %v3558_v56 = vld [vmem:[%s4121_s1 + $0xa4] ss:$16 sps:$4 sm:$0xff]   ;;  %v3559_v60 = vld [vmem:[%s4121_s1 + $0xa8] ss:$16 sps:$4 sm:$0xff]  }
 0xa71   : > { %v1685_v62 = vmul.f32 1.442695, %v1684_v61  ;;  %v3564_v61 = vld [vmem:[%s4121_s1 + $0xc4] ss:$16 sps:$4 sm:$0xff]  }
 0xa72   : > { %v1693_v63 = vpop.permute.xlu0 %1692 }
 0xa73   : > { %3618 = vpow2.f32 %v1685_v62  ;;  %3341 = vmatpush3.msra.mxu1 %v1693_v63  ;;  %v3567_v62 = vld [vmem:[%s4121_s1 + $0xcc] ss:$16 sps:$4 sm:$0xff]   ;;  %v3562_v63 = vld [vmem:[%s4121_s1 + $0xc0] ss:$16 sps:$4 sm:$0xff]  }
 0xa74   : > { %2141 = vmatprep.subr.bf16.mxu1 %v3528_v30  ;;  %v3589_v30 = vld [vmem:[%s4183_s17 + $0x98] sm:$0xff]  }
 0xa76   : > { %v1770_v15 = vpop.permute.xlu0 %1769 }
 0xa77   : > { %v1780_v19 = vsel %vm1106_vm1, %v4279_v12, %v1770_v15  ;;  %v3574_v15 = vld [vmem:[%s4183_s17 + $0x40] sm:$0xff]  }
 0xa7a   : > { %v1774_v18 = vpop.permute.xlu0 %1773 }
 0xa7b   : > { %v1782_v20 = vsel %vm1781_vm3, %v1780_v19, %v1774_v18  ;;  %v3575_v18 = vld [vmem:[%s4183_s17 + $0xc0] sm:$0xff]  }
 0xa7c   : > { %v3576_v19 = vld [vmem:[%s4183_s17] sm:$0xff]  }
 0xa7d   : > { %v3619_v0 = vpop.eup %3618 }
 0xa7e   : > { %v1687_v1 = vsel %vm1184_vm2, %v3619_v0, 0.0 }
 0xa7f   : > { %1688 = vadd.xlane.f32.xlu1 %v1687_v1  ;;  %v3570_v1 = vld [vmem:[%s4121_s1 + $0xe4] ss:$16 sps:$4 sm:$0xff]  }
 0xb0c   : > { %v1689_v2 = vpop.xlane.xlu1 %1688 }
 0xb0d   : > { %3620 = vrcp.f32 %v1689_v2  ;;  %v3573_v2 = vld [vmem:[%s4121_s1 + $0xec] ss:$16 sps:$4 sm:$0xff]  }
 0xb17   : > { %v3621_v58 = vpop.eup %3620 }
 0xb18   : > { %v1691_v3 = vmul.f32 %v3621_v58, %v3619_v0  ;;  %v3565_v0 = vld [vmem:[%s4121_s1 + $0xc8] ss:$16 sps:$4 sm:$0xff]   ;;  %v3568_v58 = vld [vmem:[%s4121_s1 + $0xe0] ss:$16 sps:$4 sm:$0xff]  }
 0xb1a   : > { %3343 = vmatmul.mubr.msk.f32.vlgmr.msra.gmra.mrb[18].mxu1 %vm1184_vm2, %v1691_v3  ;;  %v3571_v3 = vld [vmem:[%s4121_s1 + $0xe8] ss:$16 sps:$4 sm:$0xff]  }
 0xb1b   : > { %2173 = vmatprep.mubr.bf16.mxu1 %v3821_v16  ;;  %2142 = vmatpush1.bf16.msra.mxu1 %v3526_v29  ;;  %v3588_v29 = vld [vmem:[%s4183_s17 + $0x18] sm:$0xff]  }
 0xb1c   : > { %2143 = vmatprep.subr.bf16.mxu1 %v3534_v32  ;;  %v3592_v32 = vld [vmem:[%s4183_s17 + $0x20] sm:$0xff]  }
 0xb1f   : > { %2144 = vmatpush1.bf16.msra.mxu1 %v3532_v34  ;;  %v3594_v34 = vld [vmem:[%s4183_s17 + $0x68] sm:$0xff]  }
 0xb20   : > { %2145 = vmatprep.subr.bf16.mxu1 %v3540_v36  ;;  %v3596_v36 = vld [vmem:[%s4183_s17 + $0x28] sm:$0xff]  }
 0xb23   : > { %2146 = vmatpush1.bf16.msra.mxu1 %v3538_v38  ;;  %v3598_v38 = vld [vmem:[%s4183_s17 + $0x70] sm:$0xff]  }
 0xb24   : > { %2147 = vmatprep.subr.bf16.mxu1 %v3546_v47  ;;  %v3604_v47 = vld [vmem:[%s4183_s17 + $0x38] sm:$0xff]  }
 0xb27   : > { %2148 = vmatpush1.bf16.msra.mxu1 %v3544_v49  ;;  %v1959_v49 = vld [vmem:[%s4168_s30] sm:$0xf] }
 0xb28   : > { %2149 = vmatprep.subr.bf16.mxu1 %v3552_v51  ;;  %v1964_v51 = vrot.slane %v1959_v49, %v4242_v46 }
 0xb2b   : > { %2150 = vmatpush1.bf16.msra.mxu1 %v3550_v53  ;;  %v1968_v53 = vrot.slane %v1959_v49, %v888_v44 }
 0xb2c   : > { %2151 = vmatprep.subr.bf16.mxu1 %v3558_v56 }
 0xb2f   : > { %2152 = vmatpush1.bf16.msra.mxu1 %v3556_v59 }
 0xb30   : > { %2153 = vmatprep.subr.bf16.mxu1 %v3564_v61 }
 0xb33   : > { %2154 = vmatpush1.bf16.msra.mxu1 %v3562_v63 }
 0xb34   : > { %2155 = vmatprep.subr.bf16.mxu1 %v3570_v1 }
 0xb37   : > { %2156 = vmatpush1.bf16.msra.mxu1 %v3568_v58 }
 0xb38   : > { %3232 = vmatprep.subr.bf16.mxu1 %v3574_v15 }
 0xbed   : > { %v1764_v13 = vpop.f32.mrb[18].mxu1 }
 0xbee   : > { %1777 = vrot.lane.b32.xlu0 %v1764_v13, %s3824_s10  ;;  %v3344_v14 = vpop.f32.mrb[19].mxu1  ;;  %s4618_s10 = sld [smem:[#allocation31_spill]] (!%p3184_p0) }
 0xc60   : > { %v1778_v21 = vpop.permute.xlu0 %1777 }
 0xc61   : > { %v1784_v17 = vsel %vm1783_vm4, %v1782_v20, %v1778_v21  ;;  %v3577_v20 = vld [vmem:[%s4183_s17 + $0x80] sm:$0xff]   ;;  %v3578_v21 = vld [vmem:[%s4183_s17 + $0x48] sm:$0xff]  }
 0xc62   : > { %v1785_v22 = vpack.c.bf16 %v1784_v17, %v1784_v17  ;;  %v3579_v17 = vld [vmem:[%s4183_s17 + $0xc8] sm:$0xff]  }
 0xc64   : > { %3362 = vmatmul.mubr.bf16.vlgmr.msra.gmra.mrb[4].mxu0 %v1785_v22  ;;  %v3580_v22 = vld [vmem:[%s4183_s17 + $0x8] sm:$0xff]  }
 0xc65   : > { %2214 = vmatprep.mubr.bf16.mxu0 %v3821_v16  ;;  %v3529_v16 = vld [vmem:[%s4121_s1 + $0x8] ss:$16 sps:$4 sm:$0xff]  }
 0xc66   : > { %2183 = vmatpush1.bf16.msra.mxu0 %v3529_v16  ;;  %v3590_v16 = vld [vmem:[%s4183_s17 + $0x60] sm:$0xff]  }
 0xc67   : > { %2184 = vmatprep.subr.bf16.mxu0 %v3537_v33  ;;  %v3593_v33 = vld [vmem:[%s4183_s17 + $0xa0] sm:$0xff]  }
 0xc6a   : > { %2185 = vmatpush1.bf16.msra.mxu0 %v3535_v35  ;;  %v3595_v35 = vld [vmem:[%s4183_s17 + $0xe8] sm:$0xff]  }
 0xd37   : > { %v1891_v24 = vpop.f32.mrb[4].mxu0 }
 0xd38   : > { %v1892_v12 = vadd.f32 %v3106_v23, %v1891_v24  ;;  %v3363_v25 = vpop.f32.mrb[5].mxu0  ;;  %v3581_v23 = vld [vmem:[%s4183_s17 + $0x88] sm:$0xff]   ;;  %v3582_v24 = vld [vmem:[%s4183_s17 + $0x50] sm:$0xff]  }
 0xd39   : > { %v1894_v26 = vpop.f32.mrb[6].mxu0  ;;  %v3584_v25 = vld [vmem:[%s4183_s17 + $0x10] sm:$0xff]  }
 0xd3a   : > { %v3364_v27 = vpop.f32.mrb[7].mxu0  ;;  %v1897_v28 = vadd.f32 %v1892_v12, %v4220_v37  ;;  %v3543_v37 = vld [vmem:[%s4121_s1 + $0x4c] ss:$16 sps:$4 sm:$0xff]   ;;  %v3583_v12 = vld [vmem:[%s4183_s17 + $0xd0] sm:$0xff]  }
 0xd3b   : > { %2186 = vmatprep.subr.bf16.mxu0 %v3543_v37  ;;  %v3585_v26 = vld [vmem:[%s4183_s17 + $0x90] sm:$0xff]   ;;  %v3586_v27 = vld [vmem:[%s4183_s17 + $0x58] sm:$0xff]   ;;  %v3597_v37 = vld [vmem:[%s4183_s17 + $0xa8] sm:$0xff]  }
 0xd3c   : > { %1900 = vadd.xlane.f32.xlu1 %v1897_v28  ;;  %2187 = vmatpush1.bf16.msra.mxu0 %v3541_v39  ;;  %v3599_v39 = vld [vmem:[%s4183_s17 + $0xf0] sm:$0xff]  }
 0xd3d   : > { %2188 = vmatprep.subr.bf16.mxu0 %v3549_v48  ;;  %v3605_v48 = vld [vmem:[%s4183_s17 + $0xb8] sm:$0xff]  }
 0xd40   : > { %2189 = vmatpush1.bf16.msra.mxu0 %v3547_v50  ;;  %v1975_v50 = vsub.s32 3, %v4237_v43 }
 0xd41   : > { %2190 = vmatprep.subr.bf16.mxu0 %v3555_v52  ;;  %v1972_v52 = vrot.slane %v1959_v49, %v892_v54 }
 0xd44   : > { %2191 = vmatpush1.bf16.msra.mxu0 %v3553_v55  ;;  %v1976_v55 = vrot.slane %v1959_v49, %v1975_v50 }
 0xd45   : > { %2192 = vmatprep.subr.bf16.mxu0 %v3561_v57 }
 0xd48   : > { %2193 = vmatpush1.bf16.msra.mxu0 %v3559_v60 }
 0xd49   : > { %2194 = vmatprep.subr.bf16.mxu0 %v3567_v62 }
 0xd4c   : > { %2195 = vmatpush1.bf16.msra.mxu0 %v3565_v0 }
 0xd4d   : > { %2196 = vmatprep.subr.bf16.mxu0 %v3573_v2 }
 0xd50   : > { %2197 = vmatpush1.bf16.msra.mxu0 %v3571_v3 }
 0xd51   : > { %3254 = vmatprep.subr.bf16.mxu0 %v3575_v18 }
 0xdc9   : > { %v1901_v40 = vpop.xlane.xlu1 %1900 }
 0xdca   : > { %v1903_v41 = vmul.f32 0.0078125, %v1901_v40  ;;  %v3600_v40 = vld [vmem:[%s4183_s17 + $0x30] sm:$0xff]  }
 0xdcc   : > { %v1904_v42 = vsub.f32 %v1897_v28, %v1903_v41  ;;  %v3587_v28 = vld [vmem:[%s4183_s17 + $0xd8] sm:$0xff]   ;;  %v3601_v41 = vld [vmem:[%s4183_s17 + $0xb0] sm:$0xff]  }
 0xdce   : > { %v1905_v45 = vmul.f32 %v1904_v42, %v1904_v42 }
 0xdd0   : > { %1906 = vadd.xlane.f32.xlu0 %v1905_v45  ;;  %v3603_v45 = vld [vmem:[%s4183_s17 + $0xf8] sm:$0xff]  }
 0xe5d   : > { %v1907_v4 = vpop.xlane.xlu0 %1906 }
 0xe5e   : > { %v1908_v5 = vmul.f32 0.0078125, %v1907_v4 }
 0xe60   : > { %v1909_v6 = vadd.f32 1e-05, %v1908_v5 }
 0xe62   : > { %3622 = vrsqrt.f32 %v1909_v6 }
 0xe6c   : > { %v3623_v7 = vpop.eup %3622 }
 0xe6d   : > { %v1911_v9 = vmul.f32 %v3623_v7, %v1904_v42  ;;  %v3602_v42 = vld [vmem:[%s4183_s17 + $0x78] sm:$0xff]  }
 0xe6f   : > { %v1918_v11 = vmul.f32 %v3115_v8, %v1911_v9 }
 0xe71   : > { %v4390_v13 = vadd.f32 %v3116_v10, %v1918_v11 }
 0xe73   : > { %v1926_v14 = vpack.c.bf16 %v4390_v13, %v4390_v13 }
 0xe75   : > { %2174 = vmatmul.mubr.bf16.vlgmr.msra.gmra.mrb[20].mxu1 %v1926_v14  ;;  %2215 = vmatmul.mubr.bf16.vlgmr.msra.gmra.mrb[8].mxu0 %v1926_v14 }
 0xe76   : > { %3233 = vmatpush3.bf16.msra.mxu1 %v3576_v19  ;;  %3255 = vmatpush3.bf16.msra.mxu0 %v3577_v20 }
 0xe77   : > { %3234 = vmatprep.subr.bf16.mxu1 %v3578_v21  ;;  %3256 = vmatprep.subr.bf16.mxu0 %v3579_v17 }
 0xe7a   : > { %3235 = vmatpush3.bf16.msra.mxu1 %v3580_v22  ;;  %3257 = vmatpush3.bf16.msra.mxu0 %v3581_v23 }
 0xe7b   : > { %3236 = vmatprep.subr.bf16.mxu1 %v3582_v24  ;;  %3258 = vmatprep.subr.bf16.mxu0 %v3583_v12 }
 0xe7e   : > { %3237 = vmatpush3.bf16.msra.mxu1 %v3584_v25  ;;  %3259 = vmatpush3.bf16.msra.mxu0 %v3585_v26 }
 0xe7f   : > { %3238 = vmatprep.subr.bf16.mxu1 %v3586_v27  ;;  %3260 = vmatprep.subr.bf16.mxu0 %v3587_v28 }
 0xe82   : > { %3239 = vmatpush3.bf16.msra.mxu1 %v3588_v29  ;;  %3261 = vmatpush3.bf16.msra.mxu0 %v3589_v30 }
 0xe83   : > { %3240 = vmatprep.subr.bf16.mxu1 %v3590_v16  ;;  %3262 = vmatprep.subr.bf16.mxu0 %v3591_v31 }
 0xe86   : > { %3241 = vmatpush3.bf16.msra.mxu1 %v3592_v32  ;;  %3263 = vmatpush3.bf16.msra.mxu0 %v3593_v33 }
 0xe87   : > { %3242 = vmatprep.subr.bf16.mxu1 %v3594_v34  ;;  %3264 = vmatprep.subr.bf16.mxu0 %v3595_v35 }
 0xe8a   : > { %3243 = vmatpush3.bf16.msra.mxu1 %v3596_v36  ;;  %3265 = vmatpush3.bf16.msra.mxu0 %v3597_v37 }
 0xe8b   : > { %3244 = vmatprep.subr.bf16.mxu1 %v3598_v38  ;;  %3266 = vmatprep.subr.bf16.mxu0 %v3599_v39 }
 0xe8e   : > { %3245 = vmatpush3.bf16.msra.mxu1 %v3600_v40  ;;  %3267 = vmatpush3.bf16.msra.mxu0 %v3601_v41 }
 0xe8f   : > { %3246 = vmatprep.subr.bf16.mxu1 %v3602_v42  ;;  %3268 = vmatprep.subr.bf16.mxu0 %v3603_v45 }
 0xe92   : > { %3247 = vmatpush3.bf16.msra.mxu1 %v3604_v47  ;;  %3269 = vmatpush3.bf16.msra.mxu0 %v3605_v48 }
 0xf48   : > { %v2175_v56 = vpop.f32.mrb[20].mxu1  ;;  %v2216_v57 = vpop.f32.mrb[8].mxu0 }
 0xf49   : > { %v4433_v59 = vadd.f32 %v2175_v56, %v1964_v51  ;;  %v4435_v60 = vadd.f32 %v2216_v57, %v1972_v52  ;;  %v2177_v61 = vpop.f32.mrb[21].mxu1  ;;  %v2218_v62 = vpop.f32.mrb[9].mxu0 }
 0xf4a   : > { %v4437_v63 = vadd.f32 %v2177_v61, %v1968_v53  ;;  %v4439_v0 = vadd.f32 %v2218_v62, %v1976_v55  ;;  %v2179_v1 = vpop.f32.mrb[22].mxu1  ;;  %v2220_v2 = vpop.f32.mrb[10].mxu0 }
 0xf4b   : > { %v4442_v54 = vmul.f32 0.70710677, %v4433_v59  ;;  %v4445_v43 = vmul.f32 0.70710677, %v4435_v60  ;;  %v2180_v15 = vpop.f32.mrb[23].mxu1  ;;  %v2221_v18 = vpop.f32.mrb[11].mxu0 }
 0xf4c   : > { %v4448_v44 = vmul.f32 0.70710677, %v4437_v63  ;;  %v4451_v58 = vmul.f32 0.70710677, %v4439_v0 }
 0xf4d   : > { %v2231_v3 = vand.u32 2147483647, %v4442_v54  ;;  %v2233_v4 = vand.u32 2147483647, %v4445_v43  ;;  %vm2311_vm5 = vcmp.ge.f32.partialorder %v4442_v54, 0.0  ;;  %vm2313_vm6 = vcmp.ge.f32.partialorder %v4445_v43, 0.0 }
 0xf4e   : > { %v2232_v5 = vand.u32 2147483647, %v4448_v44  ;;  %v2234_v6 = vand.u32 2147483647, %v4451_v58  ;;  %vm2312_vm7 = vcmp.ge.f32.partialorder %v4448_v44, 0.0  ;;  %vm2314_vm8 = vcmp.ge.f32.partialorder %v4451_v58, 0.0 }
 0xf4f   : > { %v2235_v7 = vmul.f32 0.3275911, %v2231_v3  ;;  %v2237_v8 = vmul.f32 0.3275911, %v2233_v4  ;;  %v2287_v21 = vsub.f32 0.0, %v2231_v3  ;;  %v2289_v17 = vsub.f32 0.0, %v2233_v4 }
 0xf50   : > { %v2236_v9 = vmul.f32 0.3275911, %v2232_v5  ;;  %v2238_v14 = vmul.f32 0.3275911, %v2234_v6  ;;  %v2288_v24 = vsub.f32 0.0, %v2232_v5  ;;  %v2290_v28 = vsub.f32 0.0, %v2234_v6 }
 0xf51   : > { %v2239_v10 = vadd.f32 1.0, %v2235_v7  ;;  %v2241_v11 = vadd.f32 1.0, %v2237_v8  ;;  %v2291_v23 = vmul.f32 %v2287_v21, %v2231_v3  ;;  %v2293_v26 = vmul.f32 %v2289_v17, %v2233_v4 }
 0xf52   : > { %v2240_v19 = vadd.f32 1.0, %v2236_v9  ;;  %v2242_v20 = vadd.f32 1.0, %v2238_v14  ;;  %v2292_v32 = vmul.f32 %v2288_v24, %v2232_v5  ;;  %v2294_v38 = vmul.f32 %v2290_v28, %v2234_v6 }
 0xf53   : > { %3624 = vrcp.f32 %v2239_v10  ;;  %v2295_v16 = vmul.f32 1.442695, %v2291_v23  ;;  %v2299_v34 = vmul.f32 1.442695, %v2293_v26  ;;  %v2225_v43 = vmul.f32 0.5, %v4435_v60 }
 0xf54   : > { %3626 = vrcp.f32 %v2241_v11  ;;  %v2297_v45 = vmul.f32 1.442695, %v2292_v32  ;;  %v2301_v51 = vmul.f32 1.442695, %v2294_v38  ;;  %v2224_v38 = vmul.f32 0.5, %v4437_v63 }
 0xf55   : > { %3628 = vrcp.f32 %v2240_v19  ;;  %v3149_v60 = vld [vmem:[%s800_s16] ss:$0 sm:$0xff] }
 0xf56   : > { %3630 = vrcp.f32 %v2242_v20 }
 0xf57   : > { %3632 = vpow2.f32 %v2295_v16 }
 0xf58   : > { %3634 = vpow2.f32 %v2299_v34 }
 0xf59   : > { %3636 = vpow2.f32 %v2297_v45 }
 0xf5a   : > { %3638 = vpow2.f32 %v2301_v51 }
 0xf5d   : > { %v3625_v22 = vpop.eup %3624 }
 0xf5e   : > { %v3627_v12 = vpop.eup %3626  ;;  %v2251_v25 = vmul.f32 1.0614054, %v3625_v22 }
 0xf5f   : > { %v2253_v27 = vmul.f32 1.0614054, %v3627_v12  ;;  %v3629_v30 = vpop.eup %3628 }
 0xf60   : > { %v2255_v29 = vadd.f32 -1.4531521, %v2251_v25  ;;  %v2252_v35 = vmul.f32 1.0614054, %v3629_v30  ;;  %v3631_v36 = vpop.eup %3630 }
 0xf61   : > { %v2257_v31 = vadd.f32 -1.4531521, %v2253_v27  ;;  %v2254_v41 = vmul.f32 1.0614054, %v3631_v36  ;;  %v3633_v9 = vpop.eup %3632 }
 0xf62   : > { %v2259_v33 = vmul.f32 %v3625_v22, %v2255_v29  ;;  %v2256_v40 = vadd.f32 -1.4531521, %v2252_v35  ;;  %v3635_v11 = vpop.eup %3634 }
 0xf63   : > { %v2261_v37 = vmul.f32 %v3627_v12, %v2257_v31  ;;  %v2258_v49 = vadd.f32 -1.4531521, %v2254_v41  ;;  %v3637_v23 = vpop.eup %3636  ;;  %v2226_v41 = vmul.f32 0.5, %v4439_v0 }
 0xf64   : > { %v2263_v39 = vadd.f32 1.4214138, %v2259_v33  ;;  %v2260_v48 = vmul.f32 %v3629_v30, %v2256_v40  ;;  %v3639_v28 = vpop.eup %3638 }
 0xf65   : > { %v2265_v42 = vadd.f32 1.4214138, %v2261_v37  ;;  %v2262_v55 = vmul.f32 %v3631_v36, %v2258_v49 }
 0xf66   : > { %v2267_v47 = vmul.f32 %v3625_v22, %v2263_v39  ;;  %v2264_v53 = vadd.f32 1.4214138, %v2260_v48 }
 0xf67   : > { %v2269_v50 = vmul.f32 %v3627_v12, %v2265_v42  ;;  %v2266_v62 = vadd.f32 1.4214138, %v2262_v55 }
 0xf68   : > { %v2271_v52 = vadd.f32 -0.28449672, %v2267_v47  ;;  %v2268_v61 = vmul.f32 %v3629_v30, %v2264_v53 }
 0xf69   : > { %v2273_v56 = vadd.f32 -0.28449672, %v2269_v50  ;;  %v2270_v4 = vmul.f32 %v3631_v36, %v2266_v62 }
 0xf6a   : > { %v2275_v57 = vmul.f32 %v3625_v22, %v2271_v52  ;;  %v2272_v3 = vadd.f32 -0.28449672, %v2268_v61 }
 0xf6b   : > { %v2277_v1 = vmul.f32 %v3627_v12, %v2273_v56  ;;  %v2274_v8 = vadd.f32 -0.28449672, %v2270_v4 }
 0xf6c   : > { %v2279_v2 = vadd.f32 0.2548296, %v2275_v57  ;;  %v2276_v7 = vmul.f32 %v3629_v30, %v2272_v3 }
 0xf6d   : > { %v2281_v5 = vadd.f32 0.2548296, %v2277_v1  ;;  %v2278_v18 = vmul.f32 %v3631_v36, %v2274_v8 }
 0xf6e   : > { %v2283_v6 = vmul.f32 %v3625_v22, %v2279_v2  ;;  %v2280_v15 = vadd.f32 0.2548296, %v2276_v7 }
 0xf6f   : > { %v2285_v10 = vmul.f32 %v3627_v12, %v2281_v5  ;;  %v2282_v17 = vadd.f32 0.2548296, %v2278_v18 }
 0xf70   : > { %v2303_v14 = vmul.f32 %v3633_v9, %v2283_v6  ;;  %v2284_v21 = vmul.f32 %v3629_v30, %v2280_v15  ;;  %v2223_v30 = vmul.f32 0.5, %v4433_v59 }
 0xf71   : > { %v2305_v19 = vmul.f32 %v3635_v11, %v2285_v10  ;;  %v2286_v27 = vmul.f32 %v3631_v36, %v2282_v17  ;;  %v3182_v11 = vld [vmem:[%s803_s5] ss:$0 sm:$0xff]  ;;  %v3644_v17 = vld [vmem:[%s4618_s10 + $0x10] sm:$0xff] (!%p3184_p0)  }
 0xf72   : > { %v2307_v20 = vsub.f32 1.0, %v2303_v14  ;;  %v2304_v26 = vmul.f32 %v3637_v23, %v2284_v21  ;;  %v3643_v21 = vld [vmem:[%s4618_s10 + $0x8] sm:$0xff] (!%p3184_p0)   ;;  %v3645_v23 = vld [vmem:[%s4618_s10 + $0x18] sm:$0xff] (!%p3184_p0)  }
 0xf73   : > { %v2309_v24 = vsub.f32 1.0, %v2305_v19  ;;  %v2306_v16 = vmul.f32 %v3639_v28, %v2286_v27  ;;  %v3642_v19 = vld [vmem:[%s4618_s10] sm:$0xff] (!%p3184_p0)   ;;  %v3648_v27 = vld [vmem:[%s4618_s10 + $0x30] sm:$0xff] (!%p3184_p0)  }
 0xf74   : > { %v2315_v25 = vsub.f32 0.0, %v2307_v20  ;;  %v2308_v12 = vsub.f32 1.0, %v2304_v26 }
 0xf75   : > { %v2317_v22 = vsub.f32 0.0, %v2309_v24  ;;  %v2310_v34 = vsub.f32 1.0, %v2306_v16 }
 0xf76   : > { %v2319_v29 = vsel %vm2311_vm5, %v2307_v20, %v2315_v25  ;;  %v2316_v33 = vsub.f32 0.0, %v2308_v12  ;;  %v3827_v20 = vmov (!%p3184_p0), 0.0   ;;  %v3647_v25 = vld [vmem:[%s4618_s10 + $0x28] sm:$0xff] (!%p3184_p0)  }
 0xf77   : > { %v2321_v31 = vsel %vm2313_vm6, %v2309_v24, %v2317_v22  ;;  %v2323_v32 = vadd.f32 1.0, %v2319_v29  ;;  %v2318_v36 = vsub.f32 0.0, %v2310_v34  ;;  %3365 = vmatprep.subr.bf16.mxu0 (!%p3184_p0), %v3827_v20  ;;  %v3646_v24 = vld [vmem:[%s4618_s10 + $0x20] sm:$0xff] (!%p3184_p0)   ;;  %v3649_v22 = vld [vmem:[%s4618_s10 + $0x38] sm:$0xff] (!%p3184_p0)  }
 0xf78   : > { %v2325_v35 = vadd.f32 1.0, %v2321_v31  ;;  %v2320_v37 = vsel %vm2312_vm7, %v2308_v12, %v2316_v33  ;;  %v2728_v12 = vld [vmem:[%s4619_s20] sm:$0x1] (!%p3184_p0) }
 0xf79   : > { %v2324_v54 = vadd.f32 1.0, %v2320_v37  ;;  %v2327_v39 = vmul.f32 %v2323_v32, %v2223_v30  ;;  %v2322_v40 = vsel %vm2314_vm8, %v2310_v34, %v2318_v36 }
 0xf7a   : > { %v2326_v45 = vadd.f32 1.0, %v2322_v40  ;;  %v2329_v44 = vmul.f32 %v2325_v35, %v2225_v43 }
 0xf7b   : > { %v2328_v42 = vmul.f32 %v2324_v54, %v2224_v38  ;;  %v2331_v48 = vpack.c.bf16 %v2327_v39, %v2327_v39 }
 0xf7c   : > { %v2330_v59 = vmul.f32 %v2326_v45, %v2226_v41  ;;  %v2333_v50 = vpack.c.bf16 %v2329_v44, %v2329_v44 }
 0xf7d   : > { %v2332_v47 = vpack.c.bf16 %v2328_v42, %v2328_v42 }
 0xf7e   : > { %v2334_v49 = vpack.c.bf16 %v2330_v59, %v2330_v59 }
 0xf7f   : > { %2630 = vmatprep.mubr.bf16.mxu1 %v2332_v47 }
 0xf80   : > { %2631 = vmatmul.mubr.bf16.vlgmr.msra.gmra.mrb[24].mxu1 %v2331_v48  ;;  %2670 = vmatprep.mubr.bf16.mxu0 %v2334_v49 }
 0xf81   : > { %2671 = vmatmul.mubr.bf16.vlgmr.msra.gmra.mrb[12].mxu0 %v2333_v50 }
 0xf82   : > { %3366 = vmatpush3.bf16.msra.mxu0 (!%p3184_p0), %v3642_v19  ;;  %3381 = vmatprep.mubr.msk.bf16.mxu0 (!%p3184_p0), %vm3828_vm9, %v3827_v20 }
 0xf83   : > { %3367 = vmatprep.subr.bf16.mxu0 (!%p3184_p0), %v3827_v20 }
 0xf86   : > { %3368 = vmatpush3.bf16.msra.mxu0 (!%p3184_p0), %v3643_v21 }
 0xf87   : > { %3369 = vmatprep.subr.bf16.mxu0 (!%p3184_p0), %v3827_v20 }
 0xf8a   : > { %3370 = vmatpush3.bf16.msra.mxu0 (!%p3184_p0), %v3644_v17 }
 0xf8b   : > { %3371 = vmatprep.subr.bf16.mxu0 (!%p3184_p0), %v3827_v20 }
 0xf8e   : > { %3372 = vmatpush3.bf16.msra.mxu0 (!%p3184_p0), %v3645_v23 }
 0xf8f   : > { %3373 = vmatprep.subr.bf16.mxu0 (!%p3184_p0), %v3827_v20 }
 0xf92   : > { %3374 = vmatpush3.bf16.msra.mxu0 (!%p3184_p0), %v3646_v24 }
 0xf93   : > { %3375 = vmatprep.subr.bf16.mxu0 (!%p3184_p0), %v3827_v20 }
 0xf96   : > { %3376 = vmatpush3.bf16.msra.mxu0 (!%p3184_p0), %v3647_v25 }
 0xf97   : > { %3377 = vmatprep.subr.bf16.mxu0 (!%p3184_p0), %v3827_v20 }
 0xf9a   : > { %3378 = vmatpush3.bf16.msra.mxu0 (!%p3184_p0), %v3648_v27 }
 0xf9b   : > { %3379 = vmatprep.subr.bf16.mxu0 (!%p3184_p0), %v3827_v20 }
 0xf9e   : > { %3380 = vmatpush3.bf16.msra.mxu0 (!%p3184_p0), %v3649_v22 }
0x1053   : > { %v3248_v63 = vpop.f32.mrb[24].mxu1 }
0x1054   : > { %v3249_v58 = vpop.f32.mrb[25].mxu1  ;;  %v3270_v0 = vpop.f32.mrb[12].mxu0 }
0x1055   : > { %v3250_v51 = vadd.f32 %v3249_v58, %v3248_v63  ;;  %v3251_v52 = vpop.f32.mrb[26].mxu1  ;;  %v3271_v53 = vpop.f32.mrb[13].mxu0 }
0x1056   : > { %v3252_v55 = vpop.f32.mrb[27].mxu1  ;;  %v3272_v57 = vadd.f32 %v3271_v53, %v3270_v0  ;;  %v3273_v61 = vpop.f32.mrb[14].mxu0 }
0x1057   : > { %v2633_v56 = vadd.f32 %v3250_v51, %v3149_v60  ;;  %v3274_v62 = vpop.f32.mrb[15].mxu0 }
0x1059   : > { %v2673_v1 = vadd.f32 %v3272_v57, %v2633_v56 }
0x105b   : > { %v2678_v2 = vadd.f32 %v2673_v1, %v4390_v13  ;;  %v3183_v13 = vld [vmem:[%s806_s7] ss:$0 sm:$0xff] }
0x105d   : > { %2681 = vadd.xlane.f32.xlu1 %v2678_v2 }
0x10ea   : > { %v2682_v3 = vpop.xlane.xlu1 %2681 }
0x10eb   : > { %v2683_v4 = vmul.f32 0.0078125, %v2682_v3 }
0x10ed   : > { %v2684_v5 = vsub.f32 %v2678_v2, %v2683_v4 }
0x10ef   : > { %v2685_v6 = vmul.f32 %v2684_v5, %v2684_v5 }
0x10f1   : > { %2686 = vadd.xlane.f32.xlu1 %v2685_v6 }
0x117e   : > { %v2687_v7 = vpop.xlane.xlu1 %2686 }
0x117f   : > { %v2688_v8 = vmul.f32 0.0078125, %v2687_v7 }
0x1181   : > { %v2689_v9 = vadd.f32 1e-05, %v2688_v8 }
0x1183   : > { %3640 = vrsqrt.f32 %v2689_v9 }
0x118d   : > { %v3641_v10 = vpop.eup %3640 }
0x118e   : > { %v2691_v14 = vmul.f32 %v3641_v10, %v2684_v5  ;;  %2710 = sbr.rel (%p3184_p0) target bundleno = 4723 (0x1273), region = 108 }
0x1190   : > { %v2698_v15 = vmul.f32 %v3182_v11, %v2691_v14 }
0x1192   : > { %v2705_v18 = vadd.f32 %v3183_v13, %v2698_v15 }
0x1194   : > { %2706 = vst [vmem:[#allocation2] sm:$0xff] %v2705_v18  ;;  %v2711_v26 = vpack.c.bf16 (!%p3184_p0), %v2705_v18, %v2705_v18 }
0x1196   : > { %v2730_v28 = vshrl.u32 %v2711_v26, 16 }
0x1198   : > { %v2732_v29 = vrot.slane %v2730_v28, 3 }
0x119a   : > { %3382 = vmatmul.mubr.bf16.vlgmr.msra.gmra.mrb[0].mxu0 %v2732_v29 }
0x126d   : > { %v2816_v16 = vpop.f32.mrb[0].mxu0 }
0x126e   : > { %v2817_v31 = vadd.f32 %v2816_v16, %v2728_v12  ;;  %v3383_v32 = vpop.f32.mrb[1].mxu0 }
0x126f   : > { %v2819_v33 = vpop.f32.mrb[2].mxu0 }
0x1270   : > { %v2825_v34 = vrot.slane %v2817_v31, %v4242_v46  ;;  %v3384_v30 = vpop.f32.mrb[3].mxu0 }
0x1272   : > { %2826 = vst [vmem:[%s4181_s8] sm:$0xff] %v2825_v34 }
0x1273 PF: > { %s4620_s30 = sld [smem:[#allocation14_spill]]  ;;  %s4621_s24 = sld [smem:[#allocation10_spill]] }
0x1274   : > { %s4622_s25 = sld [smem:[#allocation11_spill]]  ;;  %s4623_s26 = sld [smem:[#allocation17_spill]] }
0x1275   : > { %s4624_s27 = sld [smem:[#allocation12_spill]]  ;;  %s4625_s28 = sld [smem:[#allocation13_spill]] }
0x1276   : > { %s4626_s29 = sld [smem:[#allocation15_spill]]  ;;  %s4627_s0 = sld [smem:[#allocation16_spill]] }
0x1279   : > { %s33_s30 = sadd.s32 1, %s4620_s30  }
0x127a   : > { %p30_p4 = scmp.ge.s32.totalorder %s33_s30, 6  }
0x127c   :  { %32 = sbr.rel (!%p30_p4) target bundleno = 24 (0x18), region = 190 }
0x1283   :  { %2846 = vsyncpa [#allocation4], 1 }
0x1284   :  { %2848 = vsyncpa [#allocation4 + $0x1], 1 }
0x1285   :  { %2849 = vsyncpa [#allocation6], 1 }
0x1286   :  { %2851 = vsyncpa [#allocation6 + $0x1], 1 }

</bundles_post_ra>
